<compile_context>
chip_gen: v6e
topology: v6e:2x2x1
jax: 0.10.0
libtpu: 0.0.40
codegen_flags: <defaults>
</compile_context>

<pallas_src>
import jax
import jax.numpy as jnp
from jax import lax
from jax.experimental import pallas as pl
from jax.experimental.pallas import tpu as pltpu

# ----- module-consistent config -----
FEATURE_DIM = 50
EMBED_DIM = 16
SEQ_LEN = 8            # number of behaviors
MLP_DIMS = [32, 16]    # DeepInterestNet mlp_dims
BATCH = 256            # grown per review: fills MXU height (2 tiles of 128)
B_TILE = 128           # batch rows per grid step (one MXU pass worth)

VOCAB = FEATURE_DIM + 1
VOCAB_PAD = ((VOCAB + 7) // 8) * 8          # 56: sublane-aligned one-hot width
H1, H2 = MLP_DIMS

# --- packed weight-slab layout: one f32 (SLAB_ROWS, SLAB_COLS) VMEM input ---
SLAB_COLS = max(H1, H2)                     # 32
R_EW1 = 0                                   # (2*VOCAB_PAD, H1): [emb@W1[:E] (row0 zeroed) ; emb@W1[E:]]
R_W2 = R_EW1 + 2 * VOCAB_PAD                # 112: (H1, H2) mlp W2
R_TAIL = ((R_W2 + H1 + 7) // 8) * 8         # 144: 8-row-aligned tail tile
#   tail row 0: b1 (H1)   row 1: b2 (H2)   row 2: w3 (H2)   row 3: b3 (1)
SLAB_ROWS = R_TAIL + 8                      # 152 (multiple of 8)


def din_kernel(x_ref, slab_ref, out_ref):
    """x_ref: (Bt, S+1) int32 [behaviors | ad]; slab_ref: (SLAB_ROWS, SLAB_COLS) f32; out_ref: (1, Bt) f32."""
    Bt = x_ref.shape[0]
    S = x_ref.shape[1] - 1

    xv = x_ref[...]                                             # single load of the id block

    # ---- build the fused (Bt, 2*VOCAB_PAD) lhs on the VPU ----
    # lanes [0, VOCAB_PAD)        : behavior-id counts (padding id 0 handled by the
    #                               zeroed weight row -> no per-step mask needed)
    # lanes [VOCAB_PAD, 2*VOCAB_PAD): one-hot of the ad id (shifted by VOCAB_PAD)
    iota = lax.broadcasted_iota(jnp.int32, (Bt, 2 * VOCAB_PAD), 1)
    onehot = ((xv[:, S:S + 1] + VOCAB_PAD) == iota).astype(jnp.int32)   # ad half
    for s in range(S):                                          # S=8 unrolled int32 compare/accumulate
        onehot += (xv[:, s:s + 1] == iota).astype(jnp.int32)
    lhs = onehot.astype(jnp.float32)                            # single int->f32 convert

    # ---- tail params: one aligned (8, 32) load ----
    tail = slab_ref[R_TAIL:R_TAIL + 8, :]
    b1 = tail[0:1, 0:H1]                                        # (1, H1)
    b2 = tail[1:2, 0:H2]                                        # (1, H2)
    w3 = tail[2:3, 0:H2]                                        # (1, H2)
    b3 = tail[3:4, 0:1]                                         # (1, 1)

    # ---- layer 1: single K=112 MXU matmul against the pre-folded [EW1A; EW1B] block ----
    ew1 = slab_ref[R_EW1:R_EW1 + 2 * VOCAB_PAD, 0:H1]           # (112, H1)
    h = jnp.dot(lhs, ew1, preferred_element_type=jnp.float32) + b1
    h = jnp.maximum(h, 0.0)                                     # (Bt, H1)

    # ---- layer 2 ----
    w2 = slab_ref[R_W2:R_W2 + H1, 0:H2]                         # (H1, H2)
    h = jnp.maximum(jnp.dot(h, w2, preferred_element_type=jnp.float32) + b2, 0.0)   # (Bt, H2)

    # ---- final (·, 1) layer on VPU/XLU (MXU would only lengthen the serial tail) ----
    logit = jnp.sum(h * w3, axis=-1, keepdims=True) + b3        # (Bt, 1)
    out_ref[...] = jax.nn.sigmoid(logit).reshape(1, Bt)         # lane-dense store


@jax.jit
def din_forward(x, slab):
    """x: (B, S+1) int32 [behaviors | ad], slab: packed params. Returns (B,) probabilities."""
    B, W = x.shape
    bt = min(B, B_TILE)
    assert B % bt == 0, "batch must be a multiple of the batch tile"
    out = pl.pallas_call(
        din_kernel,
        out_shape=jax.ShapeDtypeStruct((1, B), jnp.float32),
        grid=(B // bt,),
        in_specs=[pl.BlockSpec((bt, W), lambda i: (i, 0)),
                  pl.BlockSpec((SLAB_ROWS, SLAB_COLS), lambda i: (0, 0))],
        out_specs=pl.BlockSpec((1, bt), lambda i: (0, i)),
        compiler_params=pltpu.CompilerParams(dimension_semantics=("parallel",)),
    )(x, slab)
    return out[0]


def init_params(key):
    def linear(k, fan_in, fan_out):
        kw, kb = jax.random.split(k)
        bound = 1.0 / float(fan_in) ** 0.5
        w = jax.random.uniform(kw, (fan_in, fan_out), jnp.float32, -bound, bound)
        b = jax.random.uniform(kb, (1, fan_out), jnp.float32, -bound, bound)
        return w, b

    keys = jax.random.split(key, 4)
    emb = jax.random.normal(keys[0], (VOCAB, EMBED_DIM), jnp.float32)
    mw1, mb1 = linear(keys[1], 2 * EMBED_DIM, H1)
    mw2, mb2 = linear(keys[2], H1, H2)
    mw3, mb3 = linear(keys[3], H2, 1)
    # ActivationUnit / Dice parameters intentionally not created: the reference
    # AttentionPoolingLayer discards its attention scores (output = user_behavior.sum(dim=1)).
    return dict(emb=emb, mw1=mw1, mb1=mb1, mw2=mw2, mb2=mb2, mw3=mw3, mb3=mb3)


def pack_params(params):
    """Fold the embedding into layer-1 weights and pack everything into one f32 slab."""
    emb_pad = jnp.zeros((VOCAB_PAD, EMBED_DIM), jnp.float32).at[:VOCAB].set(params["emb"])
    ew1a = emb_pad @ params["mw1"][:EMBED_DIM]          # (VOCAB_PAD, H1) behaviors half
    ew1a = ew1a.at[0].set(0.0)                          # padding id contributes nothing
    ew1b = emb_pad @ params["mw1"][EMBED_DIM:]          # (VOCAB_PAD, H1) ad half (row 0 NOT zeroed)

    slab = jnp.zeros((SLAB_ROWS, SLAB_COLS), jnp.float32)
    slab = slab.at[R_EW1:R_EW1 + VOCAB_PAD, :H1].set(ew1a)
    slab = slab.at[R_EW1 + VOCAB_PAD:R_EW1 + 2 * VOCAB_PAD, :H1].set(ew1b)
    slab = slab.at[R_W2:R_W2 + H1, :H2].set(params["mw2"])
    slab = slab.at[R_TAIL + 0, :H1].set(params["mb1"].reshape(-1))
    slab = slab.at[R_TAIL + 1, :H2].set(params["mb2"].reshape(-1))
    slab = slab.at[R_TAIL + 2, :H2].set(params["mw3"].reshape(-1))
    slab = slab.at[R_TAIL + 3, 0].set(params["mb3"].reshape(()))
    return slab


def reference(x, params):
    """Pure-JAX reference of the PyTorch forward (live path)."""
    behaviors = x[:, :-1]
    ads = x[:, -1]
    mask = (behaviors > 0).astype(jnp.float32)[..., None]
    q = params["emb"][ads]
    ub = params["emb"][behaviors] * mask
    user_interest = ub.sum(axis=1)
    z = jnp.concatenate([user_interest, q], axis=-1)
    z = jax.nn.relu(z @ params["mw1"] + params["mb1"])
    z = jax.nn.relu(z @ params["mw2"] + params["mb2"])
    z = z @ params["mw3"] + params["mb3"]
    return jax.nn.sigmoid(z[:, 0])


if __name__ == "__main__":
    key = jax.random.PRNGKey(0)
    kp, kb, ka = jax.random.split(key, 3)
    params = init_params(kp)
    slab = pack_params(params)

    behaviors = jax.random.randint(kb, (BATCH, SEQ_LEN), 0, VOCAB)   # 0 == padding
    ads = jax.random.randint(ka, (BATCH, 1), 1, VOCAB)
    x = jnp.concatenate([behaviors, ads], axis=1).astype(jnp.int32)  # (B, S+1)

    out = din_forward(x, slab)
    jax.block_until_ready(out)

    ref = reference(x, params)
    assert out.shape == (BATCH,)
    assert jnp.allclose(out, ref, atol=1e-5, rtol=1e-5), (out, ref)
    print("KERNEL_OK")
</pallas_src>

<mosaic_0001>
module attributes {stable_mosaic.version = 11 : i64} {
  func.func @din_kernel(%arg0: i32, %arg1: memref<128x9xi32, #tpu.memory_space<vmem>>, %arg2: memref<152x32xf32, #tpu.memory_space<vmem>>, %arg3: memref<1x128xf32, #tpu.memory_space<vmem>>) attributes {dimension_semantics = [#tpu.dimension_semantics<parallel>], iteration_bounds = array<i64: 2>, scalar_prefetch = 0 : i64, scratch_operands = 0 : i64, tpu.core_type = #tpu.core_type<tc>, window_params = [{transform_indices = @transform_0, window_bounds = array<i64: 128, 9>}, {pipeline_mode = #tpu.pipeline_mode<synchronous>, transform_indices = @transform_1, window_bounds = array<i64: 152, 32>}, {transform_indices = @transform_2, window_bounds = array<i64: 1, 128>}]} {
    %c0 = arith.constant 0 : index
    %c0_0 = arith.constant 0 : index
    %0 = vector.load %arg1[%c0, %c0_0] : memref<128x9xi32, #tpu.memory_space<vmem>>, vector<128x9xi32>
    %1 = tpu.iota {dimensions = array<i32: 1>} : vector<128x112xi32>
    %2 = vector.extract_strided_slice %0 {offsets = [0, 8], sizes = [128, 1], strides = [1, 1]} : vector<128x9xi32> to vector<128x1xi32>
    %c56_i32 = arith.constant 56 : i32
    %3 = vector.broadcast %c56_i32 : i32 to vector<128x1xi32>
    %4 = arith.addi %2, %3 : vector<128x1xi32>
    %5 = vector.broadcast %4 : vector<128x1xi32> to vector<128x112xi32>
    %6 = arith.cmpi eq, %5, %1 : vector<128x112xi32>
    %7 = arith.extui %6 : vector<128x112xi1> to vector<128x112xi32>
    %8 = vector.extract_strided_slice %0 {offsets = [0, 0], sizes = [128, 1], strides = [1, 1]} : vector<128x9xi32> to vector<128x1xi32>
    %9 = vector.broadcast %8 : vector<128x1xi32> to vector<128x112xi32>
    %10 = arith.cmpi eq, %9, %1 : vector<128x112xi32>
    %11 = arith.extui %10 : vector<128x112xi1> to vector<128x112xi32>
    %12 = arith.addi %7, %11 : vector<128x112xi32>
    %13 = vector.extract_strided_slice %0 {offsets = [0, 1], sizes = [128, 1], strides = [1, 1]} : vector<128x9xi32> to vector<128x1xi32>
    %14 = vector.broadcast %13 : vector<128x1xi32> to vector<128x112xi32>
    %15 = arith.cmpi eq, %14, %1 : vector<128x112xi32>
    %16 = arith.extui %15 : vector<128x112xi1> to vector<128x112xi32>
    %17 = arith.addi %12, %16 : vector<128x112xi32>
    %18 = vector.extract_strided_slice %0 {offsets = [0, 2], sizes = [128, 1], strides = [1, 1]} : vector<128x9xi32> to vector<128x1xi32>
    %19 = vector.broadcast %18 : vector<128x1xi32> to vector<128x112xi32>
    %20 = arith.cmpi eq, %19, %1 : vector<128x112xi32>
    %21 = arith.extui %20 : vector<128x112xi1> to vector<128x112xi32>
    %22 = arith.addi %17, %21 : vector<128x112xi32>
    %23 = vector.extract_strided_slice %0 {offsets = [0, 3], sizes = [128, 1], strides = [1, 1]} : vector<128x9xi32> to vector<128x1xi32>
    %24 = vector.broadcast %23 : vector<128x1xi32> to vector<128x112xi32>
    %25 = arith.cmpi eq, %24, %1 : vector<128x112xi32>
    %26 = arith.extui %25 : vector<128x112xi1> to vector<128x112xi32>
    %27 = arith.addi %22, %26 : vector<128x112xi32>
    %28 = vector.extract_strided_slice %0 {offsets = [0, 4], sizes = [128, 1], strides = [1, 1]} : vector<128x9xi32> to vector<128x1xi32>
    %29 = vector.broadcast %28 : vector<128x1xi32> to vector<128x112xi32>
    %30 = arith.cmpi eq, %29, %1 : vector<128x112xi32>
    %31 = arith.extui %30 : vector<128x112xi1> to vector<128x112xi32>
    %32 = arith.addi %27, %31 : vector<128x112xi32>
    %33 = vector.extract_strided_slice %0 {offsets = [0, 5], sizes = [128, 1], strides = [1, 1]} : vector<128x9xi32> to vector<128x1xi32>
    %34 = vector.broadcast %33 : vector<128x1xi32> to vector<128x112xi32>
    %35 = arith.cmpi eq, %34, %1 : vector<128x112xi32>
    %36 = arith.extui %35 : vector<128x112xi1> to vector<128x112xi32>
    %37 = arith.addi %32, %36 : vector<128x112xi32>
    %38 = vector.extract_strided_slice %0 {offsets = [0, 6], sizes = [128, 1], strides = [1, 1]} : vector<128x9xi32> to vector<128x1xi32>
    %39 = vector.broadcast %38 : vector<128x1xi32> to vector<128x112xi32>
    %40 = arith.cmpi eq, %39, %1 : vector<128x112xi32>
    %41 = arith.extui %40 : vector<128x112xi1> to vector<128x112xi32>
    %42 = arith.addi %37, %41 : vector<128x112xi32>
    %43 = vector.extract_strided_slice %0 {offsets = [0, 7], sizes = [128, 1], strides = [1, 1]} : vector<128x9xi32> to vector<128x1xi32>
    %44 = vector.broadcast %43 : vector<128x1xi32> to vector<128x112xi32>
    %45 = arith.cmpi eq, %44, %1 : vector<128x112xi32>
    %46 = arith.extui %45 : vector<128x112xi1> to vector<128x112xi32>
    %47 = arith.addi %42, %46 : vector<128x112xi32>
    %48 = arith.sitofp %47 : vector<128x112xi32> to vector<128x112xf32>
    %c144 = arith.constant 144 : index
    %c0_1 = arith.constant 0 : index
    %49 = vector.load %arg2[%c144, %c0_1] : memref<152x32xf32, #tpu.memory_space<vmem>>, vector<8x32xf32>
    %50 = vector.extract_strided_slice %49 {offsets = [0, 0], sizes = [1, 32], strides = [1, 1]} : vector<8x32xf32> to vector<1x32xf32>
    %51 = vector.extract_strided_slice %49 {offsets = [1, 0], sizes = [1, 16], strides = [1, 1]} : vector<8x32xf32> to vector<1x16xf32>
    %52 = vector.extract_strided_slice %49 {offsets = [2, 0], sizes = [1, 16], strides = [1, 1]} : vector<8x32xf32> to vector<1x16xf32>
    %53 = vector.extract_strided_slice %49 {offsets = [3, 0], sizes = [1, 1], strides = [1, 1]} : vector<8x32xf32> to vector<1x1xf32>
    %c0_2 = arith.constant 0 : index
    %c0_3 = arith.constant 0 : index
    %54 = vector.load %arg2[%c0_2, %c0_3] : memref<152x32xf32, #tpu.memory_space<vmem>>, vector<112x32xf32>
    %cst = arith.constant dense<0.000000e+00> : vector<128x32xf32>
    %55 = tpu.matmul %48, %54, %cst {dimension_numbers = #tpu.dot_dimension_numbers<[1], [0], [0], [1], [0, 0, 1, 1], [], []>} : vector<128x112xf32>, vector<112x32xf32>, vector<128x32xf32> -> vector<128x32xf32>
    %56 = vector.broadcast %50 : vector<1x32xf32> to vector<128x32xf32>
    %57 = arith.addf %55, %56 : vector<128x32xf32>
    %cst_4 = arith.constant 0.000000e+00 : f32
    %58 = vector.broadcast %cst_4 : f32 to vector<128x32xf32>
    %59 = arith.maximumf %57, %58 : vector<128x32xf32>
    %c112 = arith.constant 112 : index
    %c0_5 = arith.constant 0 : index
    %60 = vector.load %arg2[%c112, %c0_5] : memref<152x32xf32, #tpu.memory_space<vmem>>, vector<32x16xf32>
    %cst_6 = arith.constant dense<0.000000e+00> : vector<128x16xf32>
    %61 = tpu.matmul %59, %60, %cst_6 {dimension_numbers = #tpu.dot_dimension_numbers<[1], [0], [0], [1], [0, 0, 1, 1], [], []>} : vector<128x32xf32>, vector<32x16xf32>, vector<128x16xf32> -> vector<128x16xf32>
    %62 = vector.broadcast %51 : vector<1x16xf32> to vector<128x16xf32>
    %63 = arith.addf %61, %62 : vector<128x16xf32>
    %cst_7 = arith.constant 0.000000e+00 : f32
    %64 = vector.broadcast %cst_7 : f32 to vector<128x16xf32>
    %65 = arith.maximumf %63, %64 : vector<128x16xf32>
    %66 = vector.broadcast %52 : vector<1x16xf32> to vector<128x16xf32>
    %67 = arith.mulf %65, %66 : vector<128x16xf32>
    %cst_8 = arith.constant dense<0.000000e+00> : vector<128xf32>
    %68 = vector.multi_reduction <add>, %67, %cst_8 [1] : vector<128x16xf32> to vector<128xf32>
    %69 = vector.shape_cast %68 : vector<128xf32> to vector<128x1xf32>
    %70 = vector.broadcast %53 : vector<1x1xf32> to vector<128x1xf32>
    %71 = arith.addf %69, %70 : vector<128x1xf32>
    %72 = arith.negf %71 : vector<128x1xf32>
    %73 = math.exp %72 : vector<128x1xf32>
    %cst_9 = arith.constant 1.000000e+00 : f32
    %74 = vector.broadcast %cst_9 : f32 to vector<128x1xf32>
    %75 = arith.addf %74, %73 : vector<128x1xf32>
    %76 = arith.divf %74, %75 : vector<128x1xf32>
    %77 = vector.shape_cast %76 : vector<128x1xf32> to vector<1x128xf32>
    %c0_10 = arith.constant 0 : index
    %c0_11 = arith.constant 0 : index
    %78 = vector.load %arg3[%c0_10, %c0_11] : memref<1x128xf32, #tpu.memory_space<vmem>>, vector<1x128xf32>
    tpu.vector_store %arg3[%c0_10, %c0_11], %77 {strides = array<i32>} : memref<1x128xf32, #tpu.memory_space<vmem>>, vector<1x128xf32>,
    return
  }
  func.func @transform_0(%arg0: i32) -> (i32, i32) {
    %c0_i32 = arith.constant 0 : i32
    %c0_i32_0 = arith.constant 0 : i32
    return %arg0, %c0_i32 : i32, i32
  }
  func.func @transform_1(%arg0: i32) -> (i32, i32) {
    %c0_i32 = arith.constant 0 : i32
    %c0_i32_0 = arith.constant 0 : i32
    %c0_i32_1 = arith.constant 0 : i32
    return %c0_i32, %c0_i32_0 : i32, i32
  }
  func.func @transform_2(%arg0: i32) -> (i32, i32) {
    %c0_i32 = arith.constant 0 : i32
    %c0_i32_0 = arith.constant 0 : i32
    return %c0_i32, %arg0 : i32, i32
  }
}

</mosaic_0001>

<bundles_post_ra>
// kernel: din_forward.1
= control target key start
LH: loop header
LB: loop body
LE: loop exit
PB: predicated region body
PF: predicated region fallthrough
CT: control target
= control target key end

     0   :  { %7 = vsyncpa [#allocation3], 0  ;;  %s3610_s0 = inlined_call_operand.vmem [shape: s32[256,9], index: 0, kind: input, shape index: {}]   ;;  %s3611_s1 = inlined_call_operand.vmem [shape: f32[152,32], index: 1, kind: input, shape index: {}]   ;;  %s3612_s2 = inlined_call_operand.hbm [shape: f32[1,256], index: 2, kind: output, shape index: {}]  }
   0x1   :  { %9 = vsyncpa [#allocation3 + $0x1], 0  ;;  %s2412_s9 = smov 0   ;;  %s2414_s10 = smov 0  }
   0x2   :  { %s2416_s11 = smov 0   ;;  %s2418_s12 = smov 0  }
   0x3 LB: > { %s1915_s13 = sadd.s32 4294967295, %s2385_s12   ;;  %s1916_s14 = sadd.s32 4294967294, %s2385_s12   ;;  %s2385_s12 = sphi %s2418_s12, %s3668_s12   ;;  %s2381_s11 = sphi %s2416_s11, %s3667_s11   ;;  %s2377_s10 = sphi %s2414_s10, %s3666_s10   ;;  %s2373_s9 = sphi %s2412_s9, %s3665_s9  }
   0x4   : > { %s2435_s15 = sadd.s32 1, %s2385_s12   ;;  %s69_s16 = sadd.s32 1, %s2381_s11 }
   0x5   : > { %s66_s17 = ssub.s32 %s2385_s12, %s2435_s15  ;;  %p79_p0 = scmp.ne.s32.totalorder %s2381_s11, %s2377_s10 }
   0x6   : > { %p67_p1 = scmp.eq.s32.totalorder %s66_s17, 0  ;;  %p80_p2 = scmp.eq.s32.totalorder %s1915_s13, 1 }
   0x7   : > { %p85_p3 = scmp.ne.s32.totalorder %s2377_s10, %s2373_s9  ;;  %p86_p4 = scmp.eq.s32.totalorder %s1916_s14, 1 }
   0x8   : > { %s2445_s18 = scalar_select %p67_p1, %s2381_s11, %s69_s16  }
   0x9   : > { %p2447_p5 = por %p80_p2, %p79_p0  ;;  %p2451_p6 = por %p86_p4, %p85_p3 }
   0xa   : > { %p1919_p7 = scmp.ge.s32.totalorder %s2385_s12, 1  ;;  %p116_p8 = scmp.lt.s32.totalorder %s2385_s12, 3 }
   0xc   : > { %p117_p9 = pnand %p1919_p7, %p116_p8 }
   0xe   : > { %120 = sbr.rel (%p117_p9) target bundleno = 1327 (0x52f), region = 28 }
  0x13   : > { %s2457_s21 = sshll.u32 %s1915_s13, 4  ;;  %v3620_v0 = vmov 1   ;;  %v2388_v1 = vmov 0   ;;  %v3628_v8 = vmov 8   ;;  %v3624_v19 = vmov 2   ;;  %v1055_v36 = vld [vmem:[%s3611_s1 + $0x68] sm:$0xff] }
  0x14   : > { %2159 = vset.pattern.permute.xlu0 %v3620_v0  ;;  %2155 = vset.pattern.permute.xlu1 %v2388_v1  ;;  %p138_p10 = scmp.lt.s32.totalorder %s2457_s21, 31  ;;  %v3618_v24 = vmov 3   ;;  %v3622_v25 = vmov 4   ;;  %v3614_v28 = vmov 5   ;;  %v3626_v34 = vmov 6   ;;  %v1054_v37 = vld [vmem:[%s3611_s1 + $0x60] sm:$0xff]  ;;  %s3575_s5 = scalar_lea.hbm %s3612_s2, %s2457_s21 }
  0x15   : > { %2023 = vmatprep.subr.mxu0 %v1055_v36  ;;  %v1053_v38 = vld [vmem:[%s3611_s1 + $0x58] sm:$0xff]  ;;  %v1052_v41 = vld [vmem:[%s3611_s1 + $0x50] sm:$0xff]  ;;  %v1051_v42 = vld [vmem:[%s3611_s1 + $0x48] sm:$0xff]  ;;  %v3616_v43 = vmov 7   ;;  %s135_s28 = sand.u32 1, %s2377_s10   ;;  %s2396_s8 = smov [#allocation2]  }
  0x16   : > { %s139_s22 = scalar_select %p138_p10, %s2457_s21, 31  ;;  %2024 = vmatpush3.msra.mxu0 %v1055_v36  ;;  %v1050_v44 = vld [vmem:[%s3611_s1 + $0x40] sm:$0xff]  ;;  %v1049_v47 = vld [vmem:[%s3611_s1 + $0x38] sm:$0xff]  ;;  %v1048_v48 = vld [vmem:[%s3611_s1 + $0x30] sm:$0xff] }
  0x17   : > { %2025 = vmatprep.subr.mxu0 %v1054_v37  ;;  %v1047_v51 = vld [vmem:[%s3611_s1 + $0x28] sm:$0xff]  ;;  %v1046_v52 = vld [vmem:[%s3611_s1 + $0x20] sm:$0xff]  ;;  %v1045_v55 = vld [vmem:[%s3611_s1 + $0x18] sm:$0xff]  ;;  %s136_s29 = scalar_lea.vmem [#allocation2], %s135_s28  ;;  %s1849_s6 = scalar_lea.sflag [#allocation3], %s135_s28 }
  0x18   : > { %s1921_s23 = sshll.u32 %s139_s22, 3  ;;  %2026 = vmatpush3.msra.mxu0 %v1054_v37  ;;  %v1044_v57 = vld [vmem:[%s3611_s1 + $0x10] sm:$0xff]  ;;  %v1043_v59 = vld [vmem:[%s3611_s1 + $0x8] sm:$0xff]  ;;  %v1042_v61 = vld [vmem:[%s3611_s1] sm:$0xff]  ;;  %s1861_s30 = sshll.u32 %s136_s29, 4  ;;  %s1862_s30 = int_to_ptr.vmem [resolvable:$true] %s1861_s30 }
  0x19   : > { %s2466_s26 = scalar_lea.vmem %s3610_s0, %s1921_s23  ;;  %2027 = vmatprep.subr.mxu0 %v1053_v38  ;;  %s2325_s7 = scalar_lea.vmem %s1862_s30, 16 }
  0x1a   : > { %v2469_v2 = vld [vmem:[%s2466_s26 + $0x10] sm:$0xff]  ;;  %v2472_v3 = vld [vmem:[%s2466_s26] sm:$0xff]  ;;  %v2479_v6 = vld [vmem:[%s2466_s26 + $0x18] sm:$0xff]  ;;  %2028 = vmatpush3.msra.mxu0 %v1053_v38  ;;  %p2326_p11 = scmp.ne.s32.totalorder %s1862_s30, %s2325_s7  ;;  %s2329_s13 = sshll.u32 %s2396_s8, 4  ;;  %s2330_s13 = int_to_ptr.vmem [resolvable:$false] %s2329_s13 }
  0x1b   : > { %360 = vperm.xlu0 %2159, %v2469_v2   ;;  %258 = vperm.xlu1 %2155, %v2472_v3   ;;  %v163_v4 = vadd.s32 56, %v2469_v2  ;;  %v161_v5 = vadd.s32 56, %v2472_v3  ;;  %v2482_v7 = vld [vmem:[%s2466_s26 + $0x8] sm:$0xff]  ;;  %v164_v9 = vadd.s32 56, %v2479_v6  ;;  %v2489_v11 = vld [vmem:[%s2466_s26 + $0x20] sm:$0xff]  ;;  %v2493_v13 = vld [vmem:[%s2466_s26 + $0x30] sm:$0xff]  ;;  %p2332_p0 = scmp.lt.s32.totalorder %s1862_s30, %s2330_s13 }
  0x1c   : > { %v162_v10 = vadd.s32 56, %v2482_v7  ;;  %v165_v12 = vadd.s32 56, %v2489_v11  ;;  %v167_v14 = vadd.s32 56, %v2493_v13  ;;  %v2499_v15 = vld [vmem:[%s2466_s26 + $0x40] sm:$0xff]  ;;  %v2504_v17 = vld [vmem:[%s2466_s26 + $0x50] sm:$0xff]  ;;  %v2528_v26 = vld [vmem:[%s2466_s26 + $0x28] sm:$0xff]  ;;  %2029 = vmatprep.subr.mxu0 %v1052_v41  ;;  %p2327_p12 = pnand %p2326_p11, %p2447_p5 }
  0x1d   : > { %v169_v16 = vadd.s32 56, %v2499_v15  ;;  %v171_v18 = vadd.s32 56, %v2504_v17  ;;  %v2509_v20 = vld [vmem:[%s2466_s26 + $0x60] sm:$0xff]  ;;  %v2514_v22 = vld [vmem:[%s2466_s26 + $0x70] sm:$0xff]  ;;  %v166_v27 = vadd.s32 56, %v2528_v26  ;;  %v2551_v29 = vld [vmem:[%s2466_s26 + $0x38] sm:$0xff]  ;;  %2030 = vmatpush3.msra.mxu0 %v1052_v41 }
  0x1e   : > { %v173_v21 = vadd.s32 56, %v2509_v20  ;;  %v175_v23 = vadd.s32 56, %v2514_v22  ;;  %v2556_v30 = vld [vmem:[%s2466_s26 + $0x48] sm:$0xff]  ;;  %v2561_v31 = vld [vmem:[%s2466_s26 + $0x58] sm:$0xff]  ;;  %v168_v35 = vadd.s32 56, %v2551_v29  ;;  %2031 = vmatprep.subr.mxu0 %v1051_v42  ;;  %p2328_p13 = pneg %p2327_p12  ;;  %s2331_s14 = scalar_lea.vmem %s2330_s13, 32 }
  0x1f   : > { %2160 = vset.pattern.permute.xlu0 %v3628_v8  ;;  %2156 = vset.pattern.permute.xlu1 %v3628_v8  ;;  %v2567_v32 = vld [vmem:[%s2466_s26 + $0x68] sm:$0xff]  ;;  %v2573_v33 = vld [vmem:[%s2466_s26 + $0x78] sm:$0xff]  ;;  %p2333_p1 = scmp.lt.s32.totalorder %s2331_s14, %s2325_s7 }
  0x20   : > { %184 = vperm.xlu1 %2156, %v163_v4   ;;  %178 = vperm.xlu0 %2160, %v161_v5  }
  0x21   : > { %2032 = vmatpush3.msra.mxu0 %v1051_v42  ;;  %p2334_p2 = por %p2333_p1, %p2332_p0 }
  0x22   : > { %2033 = vmatprep.subr.mxu0 %v1050_v44 }
  0x23   : > { %2034 = vmatpush3.msra.mxu0 %v1050_v44  ;;  %p2335_p3 = pnand %p2334_p2, %p2328_p13 }
  0x24   : > { %187 = vperm.xlu1 %2156, %v164_v9   ;;  %181 = vperm.xlu0 %2160, %v162_v10   ;;  %v170_v9 = vadd.s32 56, %v2556_v30 }
  0x25   : > { %2035 = vmatprep.subr.mxu0 %v1049_v47 }
  0x26   : > { %2036 = vmatpush3.msra.mxu0 %v1049_v47 }
  0x27   : > { %2037 = vmatprep.subr.mxu0 %v1048_v48 }
  0x28   : > { %2157 = vset.pattern.permute.xlu1 %v3620_v0  ;;  %190 = vperm.xlu0 %2160, %v165_v12  }
  0x29   : > { %354 = vperm.xlu1 %2157, %v2472_v3   ;;  %2038 = vmatpush3.msra.mxu0 %v1048_v48 }
  0x2a   : > { %2039 = vmatprep.subr.mxu0 %v1047_v51 }
  0x2b   : > { %2040 = vmatpush3.msra.mxu0 %v1047_v51 }
  0x2c   : > { %196 = vperm.xlu0 %2160, %v167_v14   ;;  %2041 = vmatprep.subr.mxu0 %v1046_v52 }
  0x2d   : > { %357 = vperm.xlu1 %2157, %v2482_v7   ;;  %2042 = vmatpush3.msra.mxu0 %v1046_v52 }
  0x2e   : > { %2043 = vmatprep.subr.mxu0 %v1045_v55 }
  0x2f   : > { %2044 = vmatpush3.msra.mxu0 %v1045_v55  ;;  %v3613_v55 = vlaneseq }
  0x30   : > { %202 = vperm.xlu0 %2160, %v169_v16   ;;  %2045 = vmatprep.subr.mxu0 %v1044_v57 }
  0x31   : > { %2158 = vset.pattern.permute.xlu1 %v3624_v19  ;;  %2046 = vmatpush3.msra.mxu0 %v1044_v57 }
  0x32   : > { %450 = vperm.xlu1 %2158, %v2472_v3   ;;  %2047 = vmatprep.subr.mxu0 %v1043_v59 }
  0x33   : > { %2048 = vmatpush3.msra.mxu0 %v1043_v59 }
  0x34   : > { %208 = vperm.xlu0 %2160, %v171_v18   ;;  %2049 = vmatprep.subr.mxu0 %v1042_v61 }
  0x35   : > { %2050 = vmatpush3.msra.mxu0 %v1042_v61  ;;  %v2775_v61 = vand.u32 127, %v3613_v55 }
  0x36   : > { %453 = vperm.xlu1 %2158, %v2482_v7  }
  0x38   : > { %214 = vperm.xlu0 %2160, %v173_v21  }
  0x3a   : > { %2161 = vset.pattern.permute.xlu1 %v3618_v24 }
  0x3b   : > { %546 = vperm.xlu1 %2161, %v2472_v3  }
  0x3c   : > { %220 = vperm.xlu0 %2160, %v175_v23  }
  0x3f   : > { %2162 = vset.pattern.permute.xlu1 %v3620_v0 }
  0x40   : > { %363 = vperm.xlu1 %2162, %v2479_v6   ;;  %2220 = vset.pattern.permute.xlu0 %v3622_v25 }
  0x41   : > { %642 = vperm.xlu0 %2220, %v2472_v3  }
  0x44   : > { %2163 = vset.pattern.permute.xlu1 %v2388_v1 }
  0x45   : > { %270 = vperm.xlu1 %2163, %v2489_v11   ;;  %648 = vperm.xlu0 %2220, %v2469_v2  }
  0x49   : > { %2164 = vset.pattern.permute.xlu1 %v3624_v19  ;;  %654 = vperm.xlu0 %2220, %v2489_v11  }
  0x4a   : > { %456 = vperm.xlu1 %2164, %v2469_v2  }
  0x4d   : > { %660 = vperm.xlu0 %2220, %v2493_v13  }
  0x4e   : > { %2165 = vset.pattern.permute.xlu1 %v3628_v8 }
  0x4f   : > { %193 = vperm.xlu1 %2165, %v166_v27  }
  0x51   : > { %666 = vperm.xlu0 %2220, %v2499_v15  }
  0x53   : > { %2166 = vset.pattern.permute.xlu1 %v2388_v1 }
  0x54   : > { %273 = vperm.xlu1 %2166, %v2528_v26  }
  0x55   : > { %672 = vperm.xlu0 %2220, %v2504_v17  }
  0x58   : > { %2167 = vset.pattern.permute.xlu1 %v3622_v25 }
  0x59   : > { %645 = vperm.xlu1 %2167, %v2482_v7   ;;  %2223 = vset.pattern.permute.xlu0 %v2388_v1 }
  0x5a   : > { %261 = vperm.xlu0 %2223, %v2482_v7  }
  0x5d   : > { %2168 = vset.pattern.permute.xlu1 %v3620_v0 }
  0x5e   : > { %366 = vperm.xlu1 %2168, %v2489_v11   ;;  %264 = vperm.xlu0 %2223, %v2469_v2  }
  0x62   : > { %2169 = vset.pattern.permute.xlu1 %v3614_v28  ;;  %267 = vperm.xlu0 %2223, %v2479_v6  }
  0x63   : > { %738 = vperm.xlu1 %2169, %v2472_v3  }
  0x66   : > { %279 = vperm.xlu0 %2223, %v2551_v29  }
  0x67   : > { %2170 = vset.pattern.permute.xlu1 %v3620_v0 }
  0x68   : > { %369 = vperm.xlu1 %2170, %v2528_v26  }
  0x6a   : > { %285 = vperm.xlu0 %2223, %v2556_v30  }
  0x6c   : > { %2171 = vset.pattern.permute.xlu1 %v3614_v28 }
  0x6d   : > { %741 = vperm.xlu1 %2171, %v2482_v7  }
  0x6e   : > { %291 = vperm.xlu0 %2223, %v2561_v31  }
  0x71   : > { %2172 = vset.pattern.permute.xlu1 %v2388_v1 }
  0x72   : > { %276 = vperm.xlu1 %2172, %v2493_v13   ;;  %297 = vperm.xlu0 %2223, %v2567_v32  }
  0x76   : > { %2173 = vset.pattern.permute.xlu1 %v3624_v19  ;;  %303 = vperm.xlu0 %2223, %v2573_v33  }
  0x77   : > { %462 = vperm.xlu1 %2173, %v2489_v11  }
  0x7a   : > { %2226 = vset.pattern.permute.xlu0 %v3618_v24 }
  0x7b   : > { %2174 = vset.pattern.permute.xlu1 %v3626_v34  ;;  %549 = vperm.xlu0 %2226, %v2482_v7  }
  0x7c   : > { %834 = vperm.xlu1 %2174, %v2472_v3  }
  0x7f   : > { %552 = vperm.xlu0 %2226, %v2469_v2  }
  0x80   : > { %2175 = vset.pattern.permute.xlu1 %v3628_v8 }
  0x81   : > { %199 = vperm.xlu1 %2175, %v168_v35  }
  0x83   : > { %555 = vperm.xlu0 %2226, %v2479_v6  }
  0x85   : > { %2176 = vset.pattern.permute.xlu1 %v3624_v19 }
  0x86   : > { %465 = vperm.xlu1 %2176, %v2528_v26  }
  0x87   : > { %561 = vperm.xlu0 %2226, %v2528_v26  }
  0x8a   : > { %2177 = vset.pattern.permute.xlu1 %v3622_v25 }
  0x8b   : > { %651 = vperm.xlu1 %2177, %v2479_v6   ;;  %567 = vperm.xlu0 %2226, %v2551_v29  }
  0x8f   : > { %2178 = vset.pattern.permute.xlu1 %v3620_v0  ;;  %573 = vperm.xlu0 %2226, %v2556_v30  }
  0x90   : > { %372 = vperm.xlu1 %2178, %v2493_v13  }
  0x93   : > { %579 = vperm.xlu0 %2226, %v2561_v31  }
  0x94   : > { %2179 = vset.pattern.permute.xlu1 %v3618_v24 }
  0x95   : > { %558 = vperm.xlu1 %2179, %v2489_v11  }
  0x96   : > { %v2607_v39 = vpop.permute.xlu1 %258  ;;  %v2609_v40 = vpop.permute.xlu0 %360 }
  0x97   : > { %585 = vperm.xlu0 %2226, %v2567_v32   ;;  %vm403_vm2 = vcmp.eq.s32.totalorder %v2609_v40, %v2775_v61  ;;  %vm305_vm6 = vcmp.eq.s32.totalorder %v2607_v39, %v2775_v61 }
  0x99   : > { %2180 = vset.pattern.permute.xlu1 %v3616_v43 }
  0x9a   : > { %930 = vperm.xlu1 %2180, %v2472_v3  }
  0x9b   : > { %v2623_v45 = vpop.permute.xlu1 %184  ;;  %2233 = vset.pattern.permute.xlu0 %v3624_v19  ;;  %v2626_v46 = vpop.permute.xlu0 %178 }
  0x9c   : > { %459 = vperm.xlu0 %2233, %v2479_v6   ;;  %vm227_vm1 = vcmp.eq.s32.totalorder %v2623_v45, %v2775_v61  ;;  %v419_v45 = vsel %vm403_vm2, 1, %v2388_v1  ;;  %vm225_vm5 = vcmp.eq.s32.totalorder %v2626_v46, %v2775_v61  ;;  %v321_v46 = vsel %vm305_vm6, 1, %v2388_v1 }
  0x9e   : > { %2181 = vset.pattern.permute.xlu1 %v3620_v0 }
  0x9f   : > { %375 = vperm.xlu1 %2181, %v2551_v29   ;;  %v2637_v49 = vpop.permute.xlu1 %187  ;;  %v2639_v50 = vpop.permute.xlu0 %181 }
  0xa0   : > { %492 = vperm.xlu0 %2233, %v2514_v22   ;;  %vm226_vm11 = vcmp.eq.s32.totalorder %v2639_v50, %v2775_v61  ;;  %vm228_vm15 = vcmp.eq.s32.totalorder %v2637_v49, %v2775_v61 }
  0xa3   : > { %2182 = vset.pattern.permute.xlu1 %v3614_v28  ;;  %v2649_v53 = vpop.permute.xlu0 %190 }
  0xa4   : > { %747 = vperm.xlu1 %2182, %v2479_v6   ;;  %v2652_v54 = vpop.permute.xlu1 %354  ;;  %495 = vperm.xlu0 %2233, %v2573_v33  }
  0xa5   : > { %vm401_vm7 = vcmp.eq.s32.totalorder %v2652_v54, %v2775_v61 }
  0xa6   : > { %v417_v39 = vsel %vm401_vm7, 1, %v2388_v1 }
  0xa7   : > { %v2658_v56 = vpop.permute.xlu0 %196 }
  0xa8   : > { %2183 = vset.pattern.permute.xlu1 %v3616_v43  ;;  %v2664_v58 = vpop.permute.xlu1 %357  ;;  %2238 = vset.pattern.permute.xlu0 %v3626_v34 }
  0xa9   : > { %933 = vperm.xlu1 %2183, %v2482_v7   ;;  %837 = vperm.xlu0 %2238, %v2482_v7  }
  0xab   : > { %v2672_v60 = vpop.permute.xlu0 %202 }
  0xac   : > { %3632 = vst [vmem:[#allocation5_spill] sm:$0xff] %v2672_v60 }
  0xad   : > { %2184 = vset.pattern.permute.xlu1 %v2388_v1  ;;  %v2678_v62 = vpop.permute.xlu1 %450  ;;  %843 = vperm.xlu0 %2238, %v2479_v6  }
  0xae   : > { %282 = vperm.xlu1 %2184, %v2499_v15   ;;  %vm497_vm8 = vcmp.eq.s32.totalorder %v2678_v62, %v2775_v61  ;;  %v3645_v62 = vmov 3  }
  0xaf   : > { %v2682_v63 = vpop.permute.xlu0 %208 }
  0xb0   : > { %3633 = vst [vmem:[#allocation6_spill] sm:$0xff] %v2682_v63 }
  0xb1   : > { %v2684_v3 = vpop.permute.xlu1 %453  ;;  %849 = vperm.xlu0 %2238, %v2528_v26  }
  0xb2   : > { %2185 = vset.pattern.permute.xlu1 %v3624_v19 }
  0xb3   : > { %468 = vperm.xlu1 %2185, %v2493_v13   ;;  %v2689_v4 = vpop.permute.xlu0 %214 }
  0xb4   : > { %3634 = vst [vmem:[#allocation7_spill] sm:$0xff] %v2689_v4 }
  0xb5   : > { %855 = vperm.xlu0 %2238, %v2551_v29  }
  0xb6   : > { %v2692_v5 = vpop.permute.xlu1 %546 }
  0xb7   : > { %2186 = vset.pattern.permute.xlu1 %v3626_v34  ;;  %v2695_v7 = vpop.permute.xlu0 %220  ;;  %vm593_vm9 = vcmp.eq.s32.totalorder %v2692_v5, %v2775_v61 }
  0xb8   : > { %3635 = vst [vmem:[#allocation8_spill] sm:$0xff] %v2695_v7  ;;  %840 = vperm.xlu1 %2186, %v2469_v2   ;;  %v3641_v7 = vmov 2  }
  0xb9   : > { %861 = vperm.xlu0 %2238, %v2556_v30  }
  0xbb   : > { %v2700_v10 = vpop.permute.xlu1 %363 }
  0xbc   : > { %2187 = vset.pattern.permute.xlu1 %v3628_v8  ;;  %v2703_v12 = vpop.permute.xlu0 %642  ;;  %vm404_vm2 = vcmp.eq.s32.totalorder %v2700_v10, %v2775_v61 }
  0xbd   : > { %205 = vperm.xlu1 %2187, %v170_v9   ;;  %867 = vperm.xlu0 %2238, %v2561_v31   ;;  %vm689_vm10 = vcmp.eq.s32.totalorder %v2703_v12, %v2775_v61 }
  0xbe   : > { %v705_v50 = vsel %vm689_vm10, 1, %v2388_v1 }
  0xc0   : > { %v2706_v14 = vpop.permute.xlu1 %270  ;;  %v2708_v16 = vpop.permute.xlu0 %648 }
  0xc1   : > { %2188 = vset.pattern.permute.xlu1 %v3624_v19  ;;  %870 = vperm.xlu0 %2238, %v2509_v20  }
  0xc2   : > { %471 = vperm.xlu1 %2188, %v2551_v29  }
  0xc4   : > { %v2713_v18 = vpop.permute.xlu0 %654 }
  0xc5   : > { %v2715_v21 = vpop.permute.xlu1 %456  ;;  %2245 = vset.pattern.permute.xlu0 %v3614_v28 }
  0xc6   : > { %2189 = vset.pattern.permute.xlu1 %v3622_v25  ;;  %744 = vperm.xlu0 %2245, %v2469_v2   ;;  %vm499_vm3 = vcmp.eq.s32.totalorder %v2715_v21, %v2775_v61 }
  0xc7   : > { %657 = vperm.xlu1 %2189, %v2528_v26  }
  0xc8   : > { %v2721_v23 = vpop.permute.xlu0 %660 }
  0xc9   : > { %3636 = vst [vmem:[#allocation9_spill] sm:$0xff] %v2721_v23 }
  0xca   : > { %v2723_v27 = vpop.permute.xlu1 %193  ;;  %750 = vperm.xlu0 %2245, %v2489_v11  }
  0xcb   : > { %2190 = vset.pattern.permute.xlu1 %v3620_v0 }
  0xcc   : > { %378 = vperm.xlu1 %2190, %v2499_v15   ;;  %v2728_v35 = vpop.permute.xlu0 %666 }
  0xcd   : > { %3637 = vst [vmem:[#allocation10_spill] sm:$0xff] %v2728_v35 }
  0xce   : > { %756 = vperm.xlu0 %2245, %v2493_v13  }
  0xcf   : > { %v2731_v36 = vpop.permute.xlu1 %273 }
  0xd0   : > { %2191 = vset.pattern.permute.xlu1 %v3618_v24  ;;  %v2734_v37 = vpop.permute.xlu0 %672 }
  0xd1   : > { %3638 = vst [vmem:[#allocation11_spill] sm:$0xff] %v2734_v37  ;;  %564 = vperm.xlu1 %2191, %v2493_v13  }
  0xd2   : > { %762 = vperm.xlu0 %2245, %v2499_v15  }
  0xd4   : > { %v2738_v38 = vpop.permute.xlu1 %645 }
  0xd5   : > { %2192 = vset.pattern.permute.xlu1 %v3616_v43  ;;  %v2741_v41 = vpop.permute.xlu0 %261 }
  0xd6   : > { %936 = vperm.xlu1 %2192, %v2469_v2   ;;  %768 = vperm.xlu0 %2245, %v2504_v17   ;;  %vm306_vm12 = vcmp.eq.s32.totalorder %v2741_v41, %v2775_v61 }
  0xd7   : > { %v322_v41 = vsel %vm306_vm12, 1, %v2388_v1 }
  0xd9   : > { %v2745_v42 = vpop.permute.xlu1 %366  ;;  %v265_v44 = vpop.permute.xlu0 %264 }
  0xda   : > { %2193 = vset.pattern.permute.xlu1 %v3620_v0  ;;  %780 = vperm.xlu0 %2245, %v2514_v22   ;;  %vm307_vm0 = vcmp.eq.s32.totalorder %v265_v44, %v2775_v61  ;;  %v243_v44 = vsel %vm227_vm1, 1, %v2388_v1  ;;  %v172_v0 = vadd.s32 56, %v2561_v31  ;;  %vm402_vm1 = vcmp.eq.s32.totalorder %v2664_v58, %v2775_v61 }
  0xdb   : > { %381 = vperm.xlu1 %2193, %v2556_v30   ;;  %v323_v55 = vsel %vm307_vm0, 1, %v2388_v1  ;;  %v418_v23 = vsel %vm402_vm1, 1, %v2388_v1 }
  0xdc   : > { %v339_v24 = vadd.s32 %v323_v55, %v243_v44  ;;  %v515_v55 = vsel %vm499_vm3, 1, %v2388_v1  ;;  %vm498_vm3 = vcmp.eq.s32.totalorder %v2684_v3, %v2775_v61 }
  0xdd   : > { %v2750_v47 = vpop.permute.xlu0 %267 }
  0xde   : > { %v2752_v48 = vpop.permute.xlu1 %738  ;;  %2247 = vset.pattern.permute.xlu0 %v3616_v43  ;;  %v435_v40 = vadd.s32 %v419_v45, %v339_v24  ;;  %vm308_vm13 = vcmp.eq.s32.totalorder %v2750_v47, %v2775_v61 }
  0xdf   : > { %2194 = vset.pattern.permute.xlu1 %v3614_v28  ;;  %960 = vperm.xlu0 %2247, %v2504_v17   ;;  %vm785_vm14 = vcmp.eq.s32.totalorder %v2752_v48, %v2775_v61  ;;  %v3646_v48 = vmov 7  }
  0xe0   : > { %753 = vperm.xlu1 %2194, %v2528_v26   ;;  %v801_v47 = vsel %vm785_vm14, 1, %v2388_v1 }
  0xe1   : > { %v2758_v2 = vpop.permute.xlu0 %279 }
  0xe3   : > { %v2760_v51 = vpop.permute.xlu1 %369  ;;  %963 = vperm.xlu0 %2247, %v2561_v31  }
  0xe4   : > { %2195 = vset.pattern.permute.xlu1 %v3616_v43 }
  0xe5   : > { %939 = vperm.xlu1 %2195, %v2479_v6   ;;  %v2765_v52 = vpop.permute.xlu0 %285 }
  0xe7   : > { %969 = vperm.xlu0 %2247, %v2567_v32  }
  0xe8   : > { %v2768_v57 = vpop.permute.xlu1 %741 }
  0xe9   : > { %2196 = vset.pattern.permute.xlu1 %v2388_v1  ;;  %v2771_v59 = vpop.permute.xlu0 %291  ;;  %vm786_vm10 = vcmp.eq.s32.totalorder %v2768_v57, %v2775_v61 }
  0xea   : > { %288 = vperm.xlu1 %2196, %v2504_v17  }
  0xeb   : > { %972 = vperm.xlu0 %2247, %v2514_v22  }
  0xed   : > { %v2779_v6 = vpop.permute.xlu1 %276  ;;  %v2781_v9 = vpop.permute.xlu0 %297 }
  0xee   : > { %3639 = vst [vmem:[#allocation12_spill] sm:$0xff] %v2781_v9  ;;  %2197 = vset.pattern.permute.xlu1 %v3624_v19 }
  0xef   : > { %474 = vperm.xlu1 %2197, %v2499_v15   ;;  %2252 = vset.pattern.permute.xlu0 %v2388_v1 }
  0xf1   : > { %v2791_v28 = vpop.permute.xlu0 %303 }
  0xf2   : > { %3640 = vst [vmem:[#allocation13_spill] sm:$0xff] %v2791_v28  ;;  %v2794_v43 = vpop.permute.xlu1 %462 }
  0xf3   : > { %2198 = vset.pattern.permute.xlu1 %v3626_v34  ;;  %v531_v34 = vadd.s32 %v515_v55, %v435_v40  ;;  %v241_v40 = vsel %vm225_vm5, 1, %v2388_v1  ;;  %v3643_v55 = vmov 1  }
  0xf4   : > { %846 = vperm.xlu1 %2198, %v2489_v11  }
  0xf6   : > { %v2800_v25 = vpop.permute.xlu0 %549 }
  0xf7   : > { %v835_v19 = vpop.permute.xlu1 %834  ;;  %vm594_vm6 = vcmp.eq.s32.totalorder %v2800_v25, %v2775_v61 }
  0xf8   : > { %2199 = vset.pattern.permute.xlu1 %v3628_v8  ;;  %v513_v8 = vsel %vm497_vm8, 1, %v2388_v1  ;;  %vm881_vm0 = vcmp.eq.s32.totalorder %v835_v19, %v2775_v61  ;;  %vm1060_vm8 = vcmask 916480   ;;  %v610_v25 = vsel %vm594_vm6, 1, %v2388_v1 }
  0xf9   : > { %211 = vperm.xlu1 %2199, %v172_v0   ;;  %v3642_v0 = vmov 4   ;;  %v897_v19 = vsel %vm881_vm0, 1, %v2388_v1  ;;  %vm406_vm6 = vcmp.eq.s32.totalorder %v2760_v51, %v2775_v61 }
  0xfa   : > { %v553_v44 = vpop.permute.xlu0 %552 }
  0xfb   : > { %vm595_vm4 = vcmp.eq.s32.totalorder %v553_v44, %v2775_v61  ;;  %v337_v44 = vadd.s32 %v321_v46, %v241_v40  ;;  %v609_v40 = vsel %vm593_vm9, 1, %v2388_v1  ;;  %v242_v46 = vsel %vm226_vm11, 1, %v2388_v1 }
  0xfc   : > { %v611_v37 = vsel %vm595_vm4, 1, %v2388_v1  ;;  %v2808_v63 = vpop.permute.xlu1 %199  ;;  %vm690_vm9 = vcmp.eq.s32.totalorder %v2738_v38, %v2775_v61 }
  0xfd   : > { %v2810_v35 = vadd.s32 %v611_v37, %v531_v34  ;;  %2200 = vset.pattern.permute.xlu1 %v3641_v7  ;;  %v433_v60 = vadd.s32 %v417_v39, %v337_v44  ;;  %vm232_vm14 = vcmp.eq.s32.totalorder %v2808_v63, %v2775_v61 }
  0xfe   : > { %477 = vperm.xlu1 %2200, %v2556_v30   ;;  %v2814_v24 = vpop.permute.xlu0 %555 }
  0xff   : > { %v529_v5 = vadd.s32 %v513_v8, %v433_v60  ;;  %v324_v60 = vsel %vm308_vm13, 1, %v2388_v1  ;;  %vm596_vm4 = vcmp.eq.s32.totalorder %v2814_v24, %v2775_v61  ;;  %vm312_vm13 = vcmp.eq.s32.totalorder %v2758_v2, %v2775_v61 }
 0x100   : > { %v612_v24 = vsel %vm596_vm4, 1, %v2388_v1  ;;  %vm310_vm4 = vcmp.eq.s32.totalorder %v2731_v36, %v2775_v61  ;;  %v422_v36 = vsel %vm406_vm6, 1, %v2388_v1 }
 0x101   : > { %v2816_v21 = vpop.permute.xlu1 %465  ;;  %v625_v39 = vadd.s32 %v609_v40, %v529_v5  ;;  %v244_v40 = vsel %vm228_vm15, 1, %v2388_v1  ;;  %v338_v5 = vadd.s32 %v322_v41, %v242_v46 }
 0x102   : > { %2201 = vset.pattern.permute.xlu1 %v3642_v0  ;;  %v2819_v45 = vpop.permute.xlu0 %561  ;;  %v340_v28 = vadd.s32 %v324_v60, %v244_v40 }
 0x103   : > { %663 = vperm.xlu1 %2201, %v2551_v29   ;;  %v721_v49 = vadd.s32 %v705_v50, %v625_v39  ;;  %v434_v50 = vadd.s32 %v418_v23, %v338_v5  ;;  %v514_v23 = vsel %vm498_vm3, 1, %v2388_v1 }
 0x105   : > { %v817_v9 = vadd.s32 %v801_v47, %v721_v49  ;;  %v530_v49 = vadd.s32 %v514_v23, %v434_v50 }
 0x106   : > { %v2828_v34 = vpop.permute.xlu1 %651  ;;  %v2830_v37 = vpop.permute.xlu0 %567 }
 0x107   : > { %2202 = vset.pattern.permute.xlu1 %v3643_v55  ;;  %v913_v58 = vadd.s32 %v897_v19, %v817_v9  ;;  %v626_v3 = vadd.s32 %v610_v25, %v530_v49  ;;  %v3649_v49 = vmov 6   ;;  %vm600_vm0 = vcmp.eq.s32.totalorder %v2830_v37, %v2775_v61 }
 0x108   : > { %384 = vperm.xlu1 %2202, %v2504_v17  }
 0x10a   : > { %v2841_v54 = vpop.permute.xlu0 %573 }
 0x10b   : > { %v2844_v4 = vpop.permute.xlu1 %372  ;;  %vm602_vm6 = vcmp.eq.s32.totalorder %v2841_v54, %v2775_v61 }
 0x10c   : > { %3644 = vst [vmem:[#allocation14_spill] sm:$0xff] %v2844_v4  ;;  %2203 = vset.pattern.permute.xlu1 %v3645_v62 }
 0x10d   : > { %570 = vperm.xlu1 %2203, %v2499_v15  }
 0x10e   : > { %v2859_v12 = vpop.permute.xlu0 %579 }
 0x110   : > { %v2867_v8 = vpop.permute.xlu1 %558 }
 0x111   : > { %2204 = vset.pattern.permute.xlu1 %v3646_v48 }
 0x112   : > { %942 = vperm.xlu1 %2204, %v2489_v11   ;;  %v2875_v44 = vpop.permute.xlu0 %585  ;;  %v420_v11 = vsel %vm404_vm2, 1, %v2388_v1  ;;  %vm691_vm2 = vcmp.eq.s32.totalorder %v2708_v16, %v2775_v61  ;;  %v326_v16 = vsel %vm310_vm4, 1, %v2388_v1 }
 0x113   : > { %v436_v39 = vadd.s32 %v420_v11, %v340_v28  ;;  %v3647_v28 = vmov 5   ;;  %v706_v11 = vsel %vm690_vm9, 1, %v2388_v1  ;;  %vm502_vm9 = vcmp.eq.s32.totalorder %v2816_v21, %v2775_v61 }
 0x114   : > { %v722_v50 = vadd.s32 %v706_v11, %v626_v3  ;;  %v174_v11 = vadd.s32 56, %v2567_v32 }
 0x115   : > { %v931_v4 = vpop.permute.xlu1 %930 }
 0x116   : > { %vm977_vm5 = vcmp.eq.s32.totalorder %v931_v4, %v2775_v61  ;;  %2205 = vset.pattern.permute.xlu1 %v3643_v55 }
 0x117   : > { %v993_v10 = vsel %vm977_vm5, 1, %v2388_v1  ;;  %387 = vperm.xlu1 %2205, %v2561_v31   ;;  %v460_v46 = vpop.permute.xlu0 %459  ;;  %vm230_vm5 = vcmp.eq.s32.totalorder %v2723_v27, %v2775_v61 }
 0x118   : > { %vm500_vm7 = vcmp.eq.s32.totalorder %v460_v46, %v2775_v61  ;;  %v1009_v9 = vadd.s32 %v993_v10, %v913_v58  ;;  %v802_v10 = vsel %vm786_vm10, 1, %v2388_v1 }
 0x119   : > { %v516_v4 = vsel %vm500_vm7, 1, %v2388_v1  ;;  %v818_v38 = vadd.s32 %v802_v10, %v722_v50  ;;  %v3650_v10 = vmov 8  }
 0x11a   : > { %v532_v41 = vadd.s32 %v516_v4, %v436_v39  ;;  %v376_v60 = vpop.permute.xlu1 %375  ;;  %v1025_v47 = vcvt.s32.f32 %v1009_v9 }
 0x11b   : > { %2206 = vset.pattern.permute.xlu1 %v3647_v28  ;;  %v2902_v40 = vpop.permute.xlu0 %492  ;;  %vm408_vm15 = vcmp.eq.s32.totalorder %v376_v60, %v2775_v61 }
 0x11c   : > { %v2904_v5 = vadd.s32 %v612_v24, %v532_v41  ;;  %759 = vperm.xlu1 %2206, %v2551_v29   ;;  %2051 = vmatprep.mubr.msk.f32.mxu0 %vm1060_vm8, %v1025_v47 }
 0x11f   : > { %v2910_v19 = vpop.permute.xlu1 %747  ;;  %v2912_v58 = vpop.permute.xlu0 %495 }
 0x120   : > { %3648 = vst [vmem:[#allocation15_spill] sm:$0xff] %v2912_v58  ;;  %2207 = vset.pattern.permute.xlu1 %v3646_v48 }
 0x121   : > { %945 = vperm.xlu1 %2207, %v2528_v26  }
 0x124   : > { %v934_v46 = vpop.permute.xlu1 %933  ;;  %v838_v39 = vpop.permute.xlu0 %837 }
 0x125   : > { %vm978_vm11 = vcmp.eq.s32.totalorder %v934_v46, %v2775_v61  ;;  %vm882_vm12 = vcmp.eq.s32.totalorder %v838_v39, %v2775_v61  ;;  %2208 = vset.pattern.permute.xlu1 %v2388_v1 }
 0x126   : > { %v898_v9 = vsel %vm882_vm12, 1, %v2388_v1  ;;  %294 = vperm.xlu1 %2208, %v2509_v20   ;;  %v994_v57 = vsel %vm978_vm11, 1, %v2388_v1  ;;  %vm598_vm11 = vcmp.eq.s32.totalorder %v2819_v45, %v2775_v61 }
 0x127   : > { %v914_v24 = vadd.s32 %v898_v9, %v818_v38  ;;  %v328_v38 = vsel %vm312_vm13, 1, %v2388_v1  ;;  %v248_v9 = vsel %vm232_vm14, 1, %v2388_v1  ;;  %vm692_vm13 = vcmp.eq.s32.totalorder %v2828_v34, %v2775_v61 }
 0x128   : > { %v2926_v4 = vpop.permute.xlu0 %843  ;;  %v344_v2 = vadd.s32 %v328_v38, %v248_v9  ;;  %vm788_vm14 = vcmp.eq.s32.totalorder %v2910_v19, %v2775_v61 }
 0x129   : > { %v1010_v26 = vadd.s32 %v994_v57, %v914_v24  ;;  %v2928_v23 = vpop.permute.xlu1 %282  ;;  %v424_v57 = vsel %vm408_vm15, 1, %v2388_v1 }
 0x12a   : > { %2209 = vset.pattern.permute.xlu1 %v3641_v7  ;;  %v440_v60 = vadd.s32 %v424_v57, %v344_v2  ;;  %v707_v57 = vsel %vm691_vm2, 1, %v2388_v1 }
 0x12b   : > { %v1026_v25 = vcvt.s32.f32 %v1010_v26  ;;  %480 = vperm.xlu1 %2209, %v2504_v17   ;;  %v616_v26 = vsel %vm600_vm0, 1, %v2388_v1  ;;  %v723_v2 = vadd.s32 %v707_v57, %v2810_v35  ;;  %v246_v35 = vsel %vm230_vm5, 1, %v2388_v1 }
 0x12c   : > { %v2932_v41 = vpop.permute.xlu0 %849  ;;  %vm884_vm0 = vcmp.eq.s32.totalorder %v2926_v4, %v2775_v61 }
 0x12d   : > { %2052 = vmatmul.mubr.msk.f32.vlgmr.msra.gmra.mxu0 %vm1060_vm8, %v1026_v25  ;;  %vm886_vm15 = vcmp.eq.s32.totalorder %v2932_v41, %v2775_v61  ;;  %v900_v4 = vsel %vm884_vm0, 1, %v2388_v1 }
 0x12e   : > { %v2935_v47 = vpop.permute.xlu1 %468  ;;  %v902_v19 = vsel %vm886_vm15, 1, %v2388_v1 }
 0x12f   : > { %2210 = vset.pattern.permute.xlu1 %v3649_v49 }
 0x130   : > { %852 = vperm.xlu1 %2210, %v2493_v13   ;;  %v2939_v3 = vpop.permute.xlu0 %855 }
 0x133   : > { %v841_v50 = vpop.permute.xlu1 %840 }
 0x134   : > { %2211 = vset.pattern.permute.xlu1 %v3650_v10  ;;  %v2943_v46 = vpop.permute.xlu0 %861  ;;  %vm883_vm7 = vcmp.eq.s32.totalorder %v841_v50, %v2775_v61 }
 0x135   : > { %217 = vperm.xlu1 %2211, %v174_v11  }
 0x138   : > { %v2950_v39 = vpop.permute.xlu1 %205  ;;  %v2955_v24 = vpop.permute.xlu0 %867 }
 0x139   : > { %2212 = vset.pattern.permute.xlu1 %v3641_v7  ;;  %3651 = vst [vmem:[#allocation16_spill] sm:$0xff] %v2955_v24  ;;  %vm234_vm4 = vcmp.eq.s32.totalorder %v2950_v39, %v2775_v61 }
 0x13a   : > { %483 = vperm.xlu1 %2212, %v2561_v31  }
 0x13c   : > { %v2965_v11 = vpop.permute.xlu0 %870 }
 0x13d   : > { %v472_v63 = vpop.permute.xlu1 %471 }
 0x13e   : > { %vm504_vm1 = vcmp.eq.s32.totalorder %v472_v63, %v2775_v61  ;;  %2213 = vset.pattern.permute.xlu1 %v3642_v0 }
 0x13f   : > { %v520_v25 = vsel %vm504_vm1, 1, %v2388_v1  ;;  %669 = vperm.xlu1 %2213, %v2556_v30  }
 0x140   : > { %v536_v24 = vadd.s32 %v520_v25, %v440_v60  ;;  %v899_v60 = vsel %vm883_vm7, 1, %v2388_v1  ;;  %vm229_vm7 = vcmp.eq.s32.totalorder %v2649_v53, %v2775_v61 }
 0x141   : > { %v745_v37 = vpop.permute.xlu0 %744  ;;  %v245_v53 = vsel %vm229_vm7, 1, %v2388_v1 }
 0x142   : > { %v658_v58 = vpop.permute.xlu1 %657  ;;  %v2968_v38 = vadd.s32 %v616_v26, %v536_v24  ;;  %vm787_vm3 = vcmp.eq.s32.totalorder %v745_v37, %v2775_v61  ;;  %v342_v26 = vadd.s32 %v326_v16, %v246_v35  ;;  %v804_v16 = vsel %vm788_vm14, 1, %v2388_v1 }
 0x143   : > { %2214 = vset.pattern.permute.xlu1 %v3643_v55  ;;  %v803_v24 = vsel %vm787_vm3, 1, %v2388_v1  ;;  %vm694_vm12 = vcmp.eq.s32.totalorder %v658_v58, %v2775_v61  ;;  %vm314_vm3 = vcmp.eq.s32.totalorder %v2765_v52, %v2775_v61  ;;  %vm693_vm14 = vcmp.eq.s32.totalorder %v2713_v18, %v2775_v61 }
 0x144   : > { %390 = vperm.xlu1 %2214, %v2509_v20   ;;  %v438_v21 = vadd.s32 %v422_v36, %v342_v26  ;;  %v710_v45 = vsel %vm694_vm12, 1, %v2388_v1  ;;  %vm501_vm12 = vcmp.eq.s32.totalorder %v2794_v43, %v2775_v61 }
 0x147   : > { %v2974_v9 = vpop.permute.xlu1 %378 }
 0x148   : > { %2215 = vset.pattern.permute.xlu1 %v3645_v62 }
 0x149   : > { %576 = vperm.xlu1 %2215, %v2504_v17   ;;  %v819_v17 = vadd.s32 %v803_v24, %v723_v2  ;;  %v614_v2 = vsel %vm598_vm11, 1, %v2388_v1  ;;  %vm405_vm11 = vcmp.eq.s32.totalorder %v2745_v42, %v2775_v61  ;;  %v3099_v42 = vld [vmem:[%s2466_s26 + $0x70] sm:$0xff] }
 0x14b   : > { %v915_v25 = vadd.s32 %v899_v60, %v819_v17 }
 0x14c   : > { %v2984_v63 = vpop.permute.xlu1 %564 }
 0x14d   : > { %2216 = vset.pattern.permute.xlu1 %v3646_v48 }
 0x14e   : > { %948 = vperm.xlu1 %2216, %v2493_v13   ;;  %v518_v13 = vsel %vm502_vm9, 1, %v2388_v1  ;;  %vm309_vm9 = vcmp.eq.s32.totalorder %v2706_v14, %v2775_v61 }
 0x14f   : > { %v534_v37 = vadd.s32 %v518_v13, %v438_v21  ;;  %v325_v14 = vsel %vm309_vm9, 1, %v2388_v1 }
 0x151   : > { %v937_v27 = vpop.permute.xlu1 %936  ;;  %v630_v58 = vadd.s32 %v614_v2, %v534_v37  ;;  %v330_v2 = vsel %vm314_vm3, 1, %v2388_v1  ;;  %vm888_vm3 = vcmp.eq.s32.totalorder %v2939_v3, %v2775_v61 }
 0x152   : > { %vm979_vm10 = vcmp.eq.s32.totalorder %v937_v27, %v2775_v61  ;;  %2217 = vset.pattern.permute.xlu1 %v3643_v55 }
 0x153   : > { %v995_v51 = vsel %vm979_vm10, 1, %v2388_v1  ;;  %393 = vperm.xlu1 %2217, %v2567_v32   ;;  %v726_v35 = vadd.s32 %v710_v45, %v630_v58  ;;  %v250_v45 = vsel %vm234_vm4, 1, %v2388_v1 }
 0x154   : > { %v1011_v50 = vadd.s32 %v995_v51, %v915_v25  ;;  %v346_v39 = vadd.s32 %v330_v2, %v250_v45 }
 0x156   : > { %v1027_v57 = vcvt.s32.f32 %v1011_v50  ;;  %v3007_v24 = vpop.permute.xlu1 %381  ;;  %v176_v50 = vadd.s32 56, %v2573_v33 }
 0x157   : > { %2218 = vset.pattern.permute.xlu1 %v3647_v28  ;;  %vm410_vm5 = vcmp.eq.s32.totalorder %v3007_v24, %v2775_v61 }
 0x158   : > { %765 = vperm.xlu1 %2218, %v2556_v30   ;;  %2054 = vmatprep.mubr.msk.f32.mxu0 %vm1060_vm8, %v1027_v57  ;;  %v708_v30 = vsel %vm692_vm13, 1, %v2388_v1  ;;  %v1270_v57 = vld [vmem:[%s3611_s1 + $0x70] sm:$0xff]  ;;  %v426_v52 = vsel %vm410_vm5, 1, %v2388_v1  ;;  %vm597_vm13 = vcmp.eq.s32.totalorder %v2867_v8, %v2775_v61  ;;  %v3110_v8 = vld [vmem:[%s2466_s26 + $0x60] sm:$0xff] }
 0x159   : > { %v724_v34 = vadd.s32 %v708_v30, %v2904_v5  ;;  %v442_v24 = vadd.s32 %v426_v52, %v346_v39  ;;  %v613_v43 = vsel %vm597_vm13, 1, %v2388_v1  ;;  %v904_v52 = vsel %vm888_vm3, 1, %v2388_v1 }
 0x15b   : > { %v754_v17 = vpop.permute.xlu1 %753  ;;  %v820_v60 = vadd.s32 %v804_v16, %v724_v34  ;;  %v421_v16 = vsel %vm405_vm11, 1, %v2388_v1  ;;  %v517_v34 = vsel %vm501_vm12, 1, %v2388_v1  ;;  %vm311_vm11 = vcmp.eq.s32.totalorder %v2779_v6, %v2775_v61 }
 0x15c   : > { %vm790_vm1 = vcmp.eq.s32.totalorder %v754_v17, %v2775_v61  ;;  %2219 = vset.pattern.permute.xlu1 %v3646_v48  ;;  %vm604_vm12 = vcmp.eq.s32.totalorder %v2859_v12, %v2775_v61 }
 0x15d   : > { %v806_v36 = vsel %vm790_vm1, 1, %v2388_v1  ;;  %951 = vperm.xlu1 %2219, %v2551_v29   ;;  %v916_v25 = vadd.s32 %v900_v4, %v820_v60 }
 0x15e   : > { %v822_v41 = vadd.s32 %v806_v36, %v726_v35  ;;  %v341_v35 = vadd.s32 %v325_v14, %v245_v53  ;;  %v751_v36 = vpop.permute.xlu0 %750  ;;  %v2322_v53 = vld [vmem:[%s2466_s26 + $0x50] sm:$0xff] }
 0x15f   : > { %vm789_vm15 = vcmp.eq.s32.totalorder %v751_v36, %v2775_v61 }
 0x160   : > { %v940_v27 = vpop.permute.xlu1 %939  ;;  %v3031_v26 = vadd.s32 %v902_v19, %v822_v41  ;;  %v437_v19 = vadd.s32 %v421_v16, %v341_v35 }
 0x161   : > { %vm980_vm2 = vcmp.eq.s32.totalorder %v940_v27, %v2775_v61  ;;  %2221 = vset.pattern.permute.xlu1 %v2388_v1  ;;  %v709_v27 = vsel %vm693_vm14, 1, %v2388_v1 }
 0x162   : > { %v996_v5 = vsel %vm980_vm2, 1, %v2388_v1  ;;  %300 = vperm.xlu1 %2221, %v2514_v22   ;;  %v1273_v22 = vld [vmem:[%s3611_s1 + $0x88] sm:$0xff]  ;;  %v533_v41 = vadd.s32 %v517_v34, %v437_v19 }
 0x163   : > { %v1012_v13 = vadd.s32 %v996_v5, %v916_v25  ;;  %2075 = vmatprep.subr.mxu1 %v1273_v22  ;;  %v805_v5 = vsel %vm789_vm15, 1, %v2388_v1  ;;  %vm503_vm15 = vcmp.eq.s32.totalorder %v2935_v47, %v2775_v61  ;;  %v3653_v47 = vld [vmem:[#allocation9_spill] sm:$0xff] }
 0x164   : > { %2076 = vmatpush3.msra.mxu1 %v1273_v22  ;;  %v629_v60 = vadd.s32 %v613_v43, %v533_v41  ;;  %v3652_v43 = vld [vmem:[#allocation14_spill] sm:$0xff] }
 0x165   : > { %v1028_v51 = vcvt.s32.f32 %v1012_v13  ;;  %v3037_v21 = vpop.permute.xlu1 %288  ;;  %v2320_v13 = vld [vmem:[%s2466_s26 + $0x40] sm:$0xff]  ;;  %vm407_vm13 = vcmp.eq.s32.totalorder %v3652_v43, %v2775_v61 }
 0x166   : > { %2222 = vset.pattern.permute.xlu1 %v3641_v7  ;;  %v725_v18 = vadd.s32 %v709_v27, %v629_v60  ;;  %v620_v60 = vsel %vm604_vm12, 1, %v2388_v1  ;;  %v3186_v27 = vld [vmem:[%s2466_s26 + $0x78] sm:$0xff] }
 0x167   : > { %486 = vperm.xlu1 %2222, %v2509_v20   ;;  %2055 = vmatmul.mubr.msk.f32.gmra.mxu0 %vm1060_vm8, %v1028_v51  ;;  %v1272_v20 = vld [vmem:[%s3611_s1 + $0x80] sm:$0xff] }
 0x168   : > { %2077 = vmatprep.subr.mxu1 %v1272_v20  ;;  %v821_v22 = vadd.s32 %v805_v5, %v725_v18  ;;  %v423_v5 = vsel %vm407_vm13, 1, %v2388_v1 }
 0x169   : > { %2078 = vmatpush3.msra.mxu1 %v1272_v20 }
 0x16a   : > { %v3042_v29 = vpop.permute.xlu1 %474 }
 0x16b   : > { %2224 = vset.pattern.permute.xlu1 %v3649_v49 }
 0x16c   : > { %858 = vperm.xlu1 %2224, %v2499_v15   ;;  %v1271_v15 = vld [vmem:[%s3611_s1 + $0x78] sm:$0xff] }
 0x16d   : > { %2079 = vmatprep.subr.mxu1 %v1271_v15 }
 0x16e   : > { %2080 = vmatpush3.msra.mxu1 %v1271_v15 }
 0x16f   : > { %v3053_v37 = vpop.permute.xlu1 %846  ;;  %2081 = vmatprep.subr.mxu1 %v1270_v57 }
 0x170   : > { %2225 = vset.pattern.permute.xlu1 %v3650_v10  ;;  %2082 = vmatpush3.msra.mxu1 %v1270_v57  ;;  %vm885_vm0 = vcmp.eq.s32.totalorder %v3053_v37, %v2775_v61 }
 0x171   : > { %223 = vperm.xlu1 %2225, %v176_v50   ;;  %v901_v51 = vsel %vm885_vm0, 1, %v2388_v1  ;;  %vm599_vm0 = vcmp.eq.s32.totalorder %v2984_v63, %v2775_v61 }
 0x172   : > { %v917_v20 = vadd.s32 %v901_v51, %v821_v22  ;;  %v519_v51 = vsel %vm503_vm15, 1, %v2388_v1 }
 0x174   : > { %v3068_v10 = vpop.permute.xlu1 %211 }
 0x175   : > { %2227 = vset.pattern.permute.xlu1 %v3641_v7  ;;  %vm236_vm7 = vcmp.eq.s32.totalorder %v3068_v10, %v2775_v61 }
 0x176   : > { %489 = vperm.xlu1 %2227, %v2567_v32   ;;  %v618_v32 = vsel %vm602_vm6, 1, %v2388_v1  ;;  %vm316_vm6 = vcmp.eq.s32.totalorder %v2771_v59, %v2775_v61  ;;  %v252_v34 = vsel %vm236_vm7, 1, %v2388_v1 }
 0x177   : > { %v332_v35 = vsel %vm316_vm6, 1, %v2388_v1 }
 0x178   : > { %v348_v59 = vadd.s32 %v332_v35, %v252_v34 }
 0x179   : > { %v478_v58 = vpop.permute.xlu1 %477 }
 0x17a   : > { %vm506_vm10 = vcmp.eq.s32.totalorder %v478_v58, %v2775_v61  ;;  %2228 = vset.pattern.permute.xlu1 %v3642_v0 }
 0x17b   : > { %v522_v7 = vsel %vm506_vm10, 1, %v2388_v1  ;;  %675 = vperm.xlu1 %2228, %v2561_v31   ;;  %vm231_vm10 = vcmp.eq.s32.totalorder %v2658_v56, %v2775_v61  ;;  %v327_v56 = vsel %vm311_vm11, 1, %v2388_v1 }
 0x17c   : > { %v538_v54 = vadd.s32 %v522_v7, %v442_v24  ;;  %v247_v41 = vsel %vm231_vm10, 1, %v2388_v1  ;;  %vm890_vm10 = vcmp.eq.s32.totalorder %v2943_v46, %v2775_v61 }
 0x17d   : > { %v343_v18 = vadd.s32 %v327_v56, %v247_v41  ;;  %v3655_v56 = vlaneseq }
 0x17e   : > { %v664_v17 = vpop.permute.xlu1 %663  ;;  %v3092_v30 = vadd.s32 %v618_v32, %v538_v54 }
 0x17f   : > { %2229 = vset.pattern.permute.xlu1 %v3643_v55  ;;  %vm696_vm2 = vcmp.eq.s32.totalorder %v664_v17, %v2775_v61  ;;  %v3156_v17 = vld [vmem:[%s2466_s26 + $0x68] sm:$0xff]  ;;  %v439_v22 = vadd.s32 %v423_v5, %v343_v18 }
 0x180   : > { %396 = vperm.xlu1 %2229, %v3099_v42   ;;  %v712_v45 = vsel %vm696_vm2, 1, %v2388_v1 }
 0x183   : > { %v3104_v4 = vpop.permute.xlu1 %384 }
 0x184   : > { %2230 = vset.pattern.permute.xlu1 %v3645_v62 }
 0x185   : > { %582 = vperm.xlu1 %2230, %v3110_v8  }
 0x188   : > { %v3117_v25 = vpop.permute.xlu1 %570 }
 0x189   : > { %2231 = vset.pattern.permute.xlu1 %v3646_v48 }
 0x18a   : > { %954 = vperm.xlu1 %2231, %v2320_v13  }
 0x18d   : > { %v943_v50 = vpop.permute.xlu1 %942 }
 0x18e   : > { %vm981_vm1 = vcmp.eq.s32.totalorder %v943_v50, %v2775_v61  ;;  %2232 = vset.pattern.permute.xlu1 %v3643_v55  ;;  %v615_v50 = vsel %vm599_vm0, 1, %v2388_v1  ;;  %vm313_vm0 = vcmp.eq.s32.totalorder %v2928_v23, %v2775_v61 }
 0x18f   : > { %v997_v37 = vsel %vm981_vm1, 1, %v2388_v1  ;;  %399 = vperm.xlu1 %2232, %v2573_v33   ;;  %v728_v33 = vadd.s32 %v712_v45, %v2968_v38  ;;  %vm695_vm1 = vcmp.eq.s32.totalorder %v3653_v47, %v2775_v61  ;;  %v3657_v47 = vld [vmem:[#allocation5_spill] sm:$0xff] }
 0x190   : > { %v1013_v15 = vadd.s32 %v997_v37, %v917_v20  ;;  %v535_v20 = vadd.s32 %v519_v51, %v439_v22  ;;  %v757_v37 = vpop.permute.xlu0 %756  ;;  %vm233_vm15 = vcmp.eq.s32.totalorder %v3657_v47, %v2775_v61 }
 0x191   : > { %vm791_vm2 = vcmp.eq.s32.totalorder %v757_v37, %v2775_v61 }
 0x192   : > { %v1029_v57 = vcvt.s32.f32 %v1013_v15  ;;  %v388_v2 = vpop.permute.xlu1 %387  ;;  %v631_v63 = vadd.s32 %v615_v50, %v535_v20 }
 0x193   : > { %2234 = vset.pattern.permute.xlu1 %v3647_v28  ;;  %vm412_vm9 = vcmp.eq.s32.totalorder %v388_v2, %v2775_v61 }
 0x194   : > { %771 = vperm.xlu1 %2234, %v2561_v31   ;;  %2057 = vmatprep.mubr.msk.f32.mxu0 %vm1060_vm8, %v1029_v57  ;;  %v2321_v31 = vld [vmem:[%s2466_s26 + $0x48] sm:$0xff]  ;;  %v428_v19 = vsel %vm412_vm9, 1, %v2388_v1  ;;  %v711_v57 = vsel %vm695_vm1, 1, %v2388_v1  ;;  %vm1278_vm1 = vcmask 261120  }
 0x195   : > { %v444_v36 = vadd.s32 %v428_v19, %v348_v59  ;;  %v727_v2 = vadd.s32 %v711_v57, %v631_v63  ;;  %v249_v57 = vsel %vm233_vm15, 1, %v2388_v1 }
 0x197   : > { %v760_v55 = vpop.permute.xlu1 %759 }
 0x198   : > { %vm792_vm4 = vcmp.eq.s32.totalorder %v760_v55, %v2775_v61  ;;  %2235 = vset.pattern.permute.xlu1 %v3646_v48  ;;  %v807_v55 = vsel %vm791_vm2, 1, %v2388_v1  ;;  %vm606_vm2 = vcmp.eq.s32.totalorder %v2875_v44, %v2775_v61 }
 0x199   : > { %v808_v39 = vsel %vm792_vm4, 1, %v2388_v1  ;;  %957 = vperm.xlu1 %2235, %v2321_v31   ;;  %v622_v44 = vsel %vm606_vm2, 1, %v2388_v1 }
 0x19a   : > { %v824_v58 = vadd.s32 %v808_v39, %v728_v33 }
 0x19c   : > { %v946_v24 = vpop.permute.xlu1 %945  ;;  %v3140_v32 = vadd.s32 %v904_v52, %v824_v58  ;;  %v823_v52 = vadd.s32 %v807_v55, %v727_v2  ;;  %v329_v2 = vsel %vm313_vm0, 1, %v2388_v1 }
 0x19d   : > { %vm982_vm5 = vcmp.eq.s32.totalorder %v946_v24, %v2775_v61  ;;  %2236 = vset.pattern.permute.xlu1 %v3642_v0 }
 0x19e   : > { %v998_v3 = vsel %vm982_vm5, 1, %v2388_v1  ;;  %678 = vperm.xlu1 %2236, %v3110_v8  }
 0x19f   : > { %v1014_v38 = vadd.s32 %v998_v3, %v3031_v26 }
 0x1a1   : > { %v1030_v7 = vcvt.s32.f32 %v1014_v38  ;;  %v3147_v54 = vpop.permute.xlu1 %294 }
 0x1a2   : > { %2237 = vset.pattern.permute.xlu1 %v3649_v49 }
 0x1a3   : > { %864 = vperm.xlu1 %2237, %v2322_v53   ;;  %2058 = vmatmul.mubr.msk.f32.gmra.mxu0 %vm1060_vm8, %v1030_v7 }
 0x1a6   : > { %v3152_v14 = vpop.permute.xlu1 %480 }
 0x1a7   : > { %2239 = vset.pattern.permute.xlu1 %v3642_v0 }
 0x1a8   : > { %681 = vperm.xlu1 %2239, %v3156_v17  }
 0x1ab   : > { %v853_v16 = vpop.permute.xlu1 %852 }
 0x1ac   : > { %2240 = vset.pattern.permute.xlu1 %v3645_v62  ;;  %vm887_vm3 = vcmp.eq.s32.totalorder %v853_v16, %v2775_v61 }
 0x1ad   : > { %588 = vperm.xlu1 %2240, %v3099_v42   ;;  %v903_v33 = vsel %vm887_vm3, 1, %v2388_v1  ;;  %vm409_vm3 = vcmp.eq.s32.totalorder %v2974_v9, %v2775_v61 }
 0x1ae   : > { %v919_v31 = vadd.s32 %v903_v33, %v823_v52  ;;  %v425_v9 = vsel %vm409_vm3, 1, %v2388_v1  ;;  %v345_v52 = vadd.s32 %v329_v2, %v249_v57 }
 0x1b0   : > { %v218_v26 = vpop.permute.xlu1 %217 }
 0x1b1   : > { %2241 = vset.pattern.permute.xlu1 %v3647_v28  ;;  %vm238_vm5 = vcmp.eq.s32.totalorder %v218_v26, %v2775_v61 }
 0x1b2   : > { %774 = vperm.xlu1 %2241, %v3110_v8   ;;  %v254_v3 = vsel %vm238_vm5, 1, %v2388_v1  ;;  %vm505_vm5 = vcmp.eq.s32.totalorder %v3042_v29, %v2775_v61 }
 0x1b3   : > { %v521_v29 = vsel %vm505_vm5, 1, %v2388_v1 }
 0x1b5   : > { %v484_v10 = vpop.permute.xlu1 %483 }
 0x1b6   : > { %vm508_vm14 = vcmp.eq.s32.totalorder %v484_v10, %v2775_v61  ;;  %2242 = vset.pattern.permute.xlu1 %v3645_v62 }
 0x1b7   : > { %v524_v6 = vsel %vm508_vm14, 1, %v2388_v1  ;;  %591 = vperm.xlu1 %2242, %v3186_v27  }
 0x1b8   : > { %v540_v12 = vadd.s32 %v524_v6, %v444_v36  ;;  %v3261_v6 = vld [vmem:[%s3611_s1 + $0x90] sm:$0xff] }
 0x1ba   : > { %v670_v62 = vpop.permute.xlu1 %669  ;;  %v3194_v13 = vadd.s32 %v620_v60, %v540_v12  ;;  %v3252_v60 = vshrl.u32 %v3655_v56, 7 }
 0x1bb   : > { %2243 = vset.pattern.permute.xlu1 %v3647_v28  ;;  %vm698_vm7 = vcmp.eq.s32.totalorder %v670_v62, %v2775_v61 }
 0x1bc   : > { %777 = vperm.xlu1 %2243, %v3156_v17   ;;  %v714_v26 = vsel %vm698_vm7, 1, %v2388_v1 }
 0x1bd   : > { %v730_v19 = vadd.s32 %v714_v26, %v3092_v30 }
 0x1bf   : > { %v3202_v15 = vpop.permute.xlu1 %390 }
 0x1c0   : > { %2244 = vset.pattern.permute.xlu1 %v3642_v0  ;;  %v3654_v0 = vld [vmem:[#allocation12_spill] sm:$0xff] }
 0x1c1   : > { %684 = vperm.xlu1 %2244, %v3099_v42   ;;  %vm318_vm4 = vcmp.eq.s32.totalorder %v3654_v0, %v2775_v61 }
 0x1c2   : > { %v334_v24 = vsel %vm318_vm4, 1, %v2388_v1 }
 0x1c3   : > { %v350_v16 = vadd.s32 %v334_v24, %v254_v3  ;;  %v441_v24 = vadd.s32 %v425_v9, %v345_v52 }
 0x1c4   : > { %v3209_v45 = vpop.permute.xlu1 %576 }
 0x1c5   : > { %687 = vperm.xlu1 %2244, %v3186_v27  }
 0x1c9   : > { %2246 = vset.pattern.permute.xlu1 %v3649_v49  ;;  %v949_v39 = vpop.permute.xlu1 %948 }
 0x1ca   : > { %vm983_vm6 = vcmp.eq.s32.totalorder %v949_v39, %v2775_v61  ;;  %873 = vperm.xlu1 %2246, %v3156_v17  }
 0x1cb   : > { %v999_v58 = vsel %vm983_vm6, 1, %v2388_v1  ;;  %vm601_vm6 = vcmp.eq.s32.totalorder %v3117_v25, %v2775_v61 }
 0x1cc   : > { %v1015_v38 = vadd.s32 %v999_v58, %v919_v31  ;;  %v3658_v31 = vld [vmem:[#allocation7_spill] sm:$0xff]  ;;  %v3659_v58 = vld [vmem:[#allocation8_spill] sm:$0xff]  ;;  %v617_v3 = vsel %vm601_vm6, 1, %v2388_v1 }
 0x1ce   : > { %v1031_v7 = vcvt.s32.f32 %v1015_v38  ;;  %2248 = vset.pattern.permute.xlu1 %v3646_v48  ;;  %v394_v53 = vpop.permute.xlu1 %393  ;;  %v3660_v38 = vld [vmem:[#allocation10_spill] sm:$0xff] }
 0x1cf   : > { %vm414_vm9 = vcmp.eq.s32.totalorder %v394_v53, %v2775_v61  ;;  %966 = vperm.xlu1 %2248, %v3110_v8   ;;  %v906_v8 = vsel %vm890_vm10, 1, %v2388_v1  ;;  %vm237_vm10 = vcmp.eq.s32.totalorder %v3658_v31, %v2775_v61 }
 0x1d0   : > { %v430_v17 = vsel %vm414_vm9, 1, %v2388_v1  ;;  %2060 = vmatprep.mubr.msk.f32.mxu0 %vm1060_vm8, %v1031_v7  ;;  %vm317_vm9 = vcmp.eq.s32.totalorder %v3147_v54, %v2775_v61  ;;  %v537_v54 = vadd.s32 %v521_v29, %v441_v24  ;;  %v253_v53 = vsel %vm237_vm10, 1, %v2388_v1 }
 0x1d1   : > { %v446_v35 = vadd.s32 %v430_v17, %v350_v16  ;;  %v333_v7 = vsel %vm317_vm9, 1, %v2388_v1  ;;  %v763_v17 = vpop.permute.xlu0 %762  ;;  %vm315_vm10 = vcmp.eq.s32.totalorder %v3037_v21, %v2775_v61  ;;  %v3663_v21 = vld [vmem:[#allocation16_spill] sm:$0xff] }
 0x1d2   : > { %v633_v26 = vadd.s32 %v617_v3, %v537_v54  ;;  %vm793_vm2 = vcmp.eq.s32.totalorder %v763_v17, %v2775_v61  ;;  %v331_v9 = vsel %vm315_vm10, 1, %v2388_v1  ;;  %vm893_vm10 = vcmp.eq.s32.totalorder %v2965_v11, %v2775_v61 }
 0x1d3   : > { %2249 = vset.pattern.permute.xlu1 %v3647_v28  ;;  %v766_v34 = vpop.permute.xlu1 %765 }
 0x1d4   : > { %vm794_vm11 = vcmp.eq.s32.totalorder %v766_v34, %v2775_v61  ;;  %783 = vperm.xlu1 %2249, %v3186_v27  }
 0x1d5   : > { %v810_v59 = vsel %vm794_vm11, 1, %v2388_v1  ;;  %vm239_vm11 = vcmp.eq.s32.totalorder %v3659_v58, %v2775_v61 }
 0x1d6   : > { %v826_v10 = vadd.s32 %v810_v59, %v730_v19  ;;  %v255_v16 = vsel %vm239_vm11, 1, %v2388_v1 }
 0x1d8   : > { %2250 = vset.pattern.permute.xlu1 %v3649_v49  ;;  %v952_v43 = vpop.permute.xlu1 %951  ;;  %v3239_v36 = vadd.s32 %v906_v8, %v826_v10  ;;  %v349_v8 = vadd.s32 %v333_v7, %v253_v53 }
 0x1d9   : > { %vm984_vm12 = vcmp.eq.s32.totalorder %v952_v43, %v2775_v61  ;;  %876 = vperm.xlu1 %2250, %v3099_v42  }
 0x1da   : > { %v1000_v28 = vsel %vm984_vm12, 1, %v2388_v1  ;;  %vm413_vm12 = vcmp.eq.s32.totalorder %v3202_v15, %v2775_v61 }
 0x1db   : > { %v1016_v46 = vadd.s32 %v1000_v28, %v3140_v32  ;;  %v1058_v32 = vsub.s32 0, %v3252_v60 }
 0x1dd   : > { %v1032_v30 = vcvt.s32.f32 %v1016_v46  ;;  %879 = vperm.xlu1 %2250, %v3186_v27   ;;  %v301_v41 = vpop.permute.xlu1 %300 }
 0x1de   : > { %vm319_vm7 = vcmp.eq.s32.totalorder %v301_v41, %v2775_v61 }
 0x1df   : > { %2061 = vmatmul.mubr.msk.f32.gmra.mxu0 %vm1060_vm8, %v1032_v30  ;;  %v335_v25 = vsel %vm319_vm7, 1, %v2388_v1 }
 0x1e0   : > { %v351_v34 = vadd.s32 %v335_v25, %v255_v16  ;;  %v3664_v16 = vld [vmem:[#allocation11_spill] sm:$0xff] }
 0x1e1   : > { %2251 = vset.pattern.permute.xlu1 %v3646_v48  ;;  %v3656_v48 = vld [vmem:[#allocation13_spill] sm:$0xff] }
 0x1e2   : > { %975 = vperm.xlu1 %2251, %v3186_v27   ;;  %v3249_v49 = vpop.permute.xlu1 %486  ;;  %vm320_vm13 = vcmp.eq.s32.totalorder %v3656_v48, %v2775_v61  ;;  %v3266_v27 = vrot.slane %v3261_v6, %v1058_v32 }
 0x1e3   : > { %v336_v18 = vsel %vm320_vm13, 1, %v2388_v1  ;;  %vm697_vm13 = vcmp.eq.s32.totalorder %v3660_v38, %v2775_v61  ;;  %vm509_vm15 = vcmp.eq.s32.totalorder %v3249_v49, %v2775_v61  ;;  %v809_v49 = vsel %vm793_vm2, 1, %v2388_v1 }
 0x1e4   : > { %v525_v10 = vsel %vm509_vm15, 1, %v2388_v1 }
 0x1e6   : > { %2253 = vset.pattern.permute.xlu1 %v2388_v1 }
 0x1e7   : > { %v3255_v42 = vpop.permute.xlu1 %858 }
 0x1e8   : > { %vm889_vm3 = vcmp.eq.s32.totalorder %v3255_v42, %v2775_v61 }
 0x1e9   : > { %v905_v48 = vsel %vm889_vm3, 1, %v2388_v1  ;;  %vm699_vm3 = vcmp.eq.s32.totalorder %v3664_v16, %v2775_v61 }
 0x1ec   : > { %v224_v12 = vpop.permute.xlu1 %223 }
 0x1ed   : > { %vm240_vm14 = vcmp.eq.s32.totalorder %v224_v12, %v2775_v61  ;;  %v2053_v5 = vpop.f32.mrf.mxu0 }
 0x1ee   : > { %v256_v62 = vsel %vm240_vm14, 1, %v2388_v1  ;;  %v1181_v22 = vadd.f32 %v2053_v5, %v3266_v27  ;;  %vm511_vm14 = vcmp.eq.s32.totalorder %v2902_v40, %v2775_v61  ;;  %v713_v40 = vsel %vm697_vm13, 1, %v2388_v1 }
 0x1ef   : > { %v3271_v51 = vadd.s32 %v336_v18, %v256_v62  ;;  %v1175_v50 = vpop.f32.mrf.mxu0  ;;  %v527_v19 = vsel %vm511_vm14, 1, %v2388_v1  ;;  %v729_v46 = vadd.s32 %v713_v40, %v633_v26  ;;  %vm892_vm13 = vcmp.eq.s32.totalorder %v3663_v21, %v2775_v61 }
 0x1f0   : > { %v1176_v20 = vadd.f32 %v1175_v50, %v3266_v27  ;;  %v1255_v55 = vmax.f32 %v1181_v22, 0.0  ;;  %v769_v50 = vpop.permute.xlu0 %768  ;;  %vm507_vm14 = vcmp.eq.s32.totalorder %v3152_v14, %v2775_v61  ;;  %v908_v29 = vsel %vm892_vm13, 1, %v2388_v1 }
 0x1f1   : > { %v490_v37 = vpop.permute.xlu1 %489  ;;  %v825_v5 = vadd.s32 %v809_v49, %v729_v46  ;;  %v523_v24 = vsel %vm507_vm14, 1, %v2388_v1 }
 0x1f2   : > { %v1254_v63 = vmax.f32 %v1176_v20, 0.0  ;;  %vm510_vm4 = vcmp.eq.s32.totalorder %v490_v37, %v2775_v61  ;;  %v3661_v37 = vld [vmem:[#allocation6_spill] sm:$0xff] }
 0x1f3   : > { %v526_v23 = vsel %vm510_vm4, 1, %v2388_v1  ;;  %v921_v62 = vadd.s32 %v905_v48, %v825_v5  ;;  %vm235_vm7 = vcmp.eq.s32.totalorder %v3661_v37, %v2775_v61 }
 0x1f4   : > { %v542_v33 = vadd.s32 %v526_v23, %v446_v35  ;;  %2083 = vmatprep.mubr.msk.f32.mxu1 %vm1278_vm1, %v1254_v63  ;;  %v429_v35 = vsel %vm413_vm12, 1, %v2388_v1  ;;  %v3662_v63 = vld [vmem:[#allocation15_spill] sm:$0xff]  ;;  %vm411_vm12 = vcmp.eq.s32.totalorder %v3104_v4, %v2775_v61  ;;  %v3351_v23 = vpop.permute.xlu0 %780 }
 0x1f5   : > { %2084 = vmatmul.mubr.msk.f32.vlgmr.msra.gmra.mxu1 %vm1278_vm1, %v1255_v55  ;;  %v445_v28 = vadd.s32 %v429_v35, %v349_v8  ;;  %vm512_vm9 = vcmp.eq.s32.totalorder %v3662_v63, %v2775_v61 }
 0x1f6   : > { %v676_v0 = vpop.permute.xlu1 %675  ;;  %v3296_v39 = vadd.s32 %v622_v44, %v542_v33  ;;  %v251_v33 = vsel %vm235_vm7, 1, %v2388_v1  ;;  %v528_v44 = vsel %vm512_vm9, 1, %v2388_v1 }
 0x1f7   : > { %v541_v56 = vadd.s32 %v525_v10, %v445_v28  ;;  %vm700_vm6 = vcmp.eq.s32.totalorder %v676_v0, %v2775_v61  ;;  %v427_v0 = vsel %vm411_vm12, 1, %v2388_v1  ;;  %v347_v31 = vadd.s32 %v331_v9, %v251_v33 }
 0x1f8   : > { %v716_v2 = vsel %vm700_vm6, 1, %v2388_v1  ;;  %v961_v25 = vpop.permute.xlu0 %960 }
 0x1f9   : > { %v443_v3 = vadd.s32 %v427_v0, %v347_v31  ;;  %vm987_vm6 = vcmp.eq.s32.totalorder %v961_v25, %v2775_v61 }
 0x1fa   : > { %v1003_v10 = vsel %vm987_vm6, 1, %v2388_v1 }
 0x1fb   : > { %v397_v15 = vpop.permute.xlu1 %396 }
 0x1fc   : > { %vm415_vm0 = vcmp.eq.s32.totalorder %v397_v15, %v2775_v61  ;;  %v964_v15 = vpop.permute.xlu0 %963 }
 0x1fd   : > { %v431_v59 = vsel %vm415_vm0, 1, %v2388_v1  ;;  %vm603_vm0 = vcmp.eq.s32.totalorder %v3209_v45, %v2775_v61 }
 0x1fe   : > { %v447_v43 = vadd.s32 %v431_v59, %v351_v34  ;;  %v619_v38 = vsel %vm603_vm0, 1, %v2388_v1  ;;  %v715_v34 = vsel %vm699_vm3, 1, %v2388_v1 }
 0x200   : > { %v583_v30 = vpop.permute.xlu1 %582  ;;  %v3327_v41 = vadd.s32 %v527_v19, %v447_v43 }
 0x201   : > { %vm605_vm4 = vcmp.eq.s32.totalorder %v583_v30, %v2775_v61 }
 0x202   : > { %v621_v32 = vsel %vm605_vm4, 1, %v2388_v1  ;;  %vm795_vm4 = vcmp.eq.s32.totalorder %v769_v50, %v2775_v61 }
 0x203   : > { %v3333_v12 = vadd.s32 %v621_v32, %v541_v56  ;;  %v811_v19 = vsel %vm795_vm4, 1, %v2388_v1  ;;  %vm799_vm4 = vcmp.eq.s32.totalorder %v3351_v23, %v2775_v61 }
 0x205   : > { %v955_v18 = vpop.permute.xlu1 %954 }
 0x206   : > { %vm985_vm5 = vcmp.eq.s32.totalorder %v955_v18, %v2775_v61 }
 0x207   : > { %v1001_v42 = vsel %vm985_vm5, 1, %v2388_v1  ;;  %vm988_vm5 = vcmp.eq.s32.totalorder %v964_v15, %v2775_v61  ;;  %v815_v15 = vsel %vm799_vm4, 1, %v2388_v1  ;;  %vm1795_vm4 = vcmask 589312  }
 0x208   : > { %v1017_v22 = vadd.s32 %v1001_v42, %v921_v62 }
 0x20a   : > { %v1033_v47 = vcvt.s32.f32 %v1017_v22  ;;  %v400_v20 = vpop.permute.xlu1 %399 }
 0x20b   : > { %vm416_vm11 = vcmp.eq.s32.totalorder %v400_v20, %v2775_v61 }
 0x20c   : > { %v432_v57 = vsel %vm416_vm11, 1, %v2388_v1  ;;  %2063 = vmatprep.mubr.msk.f32.mxu0 %vm1060_vm8, %v1033_v47 }
 0x20d   : > { %v448_v55 = vadd.s32 %v432_v57, %v3271_v51  ;;  %v732_v51 = vadd.s32 %v716_v2, %v3194_v13  ;;  %v539_v13 = vadd.s32 %v523_v24, %v443_v3  ;;  %v909_v2 = vsel %vm893_vm10, 1, %v2388_v1 }
 0x20f   : > { %v772_v52 = vpop.permute.xlu1 %771  ;;  %v3360_v4 = vadd.s32 %v528_v44, %v448_v55  ;;  %v635_v45 = vadd.s32 %v619_v38, %v539_v13 }
 0x210   : > { %vm796_vm15 = vcmp.eq.s32.totalorder %v772_v52, %v2775_v61  ;;  %v970_v52 = vpop.permute.xlu0 %969 }
 0x211   : > { %v812_v58 = vsel %vm796_vm15, 1, %v2388_v1  ;;  %v731_v40 = vadd.s32 %v715_v34, %v635_v45  ;;  %vm990_vm15 = vcmp.eq.s32.totalorder %v970_v52, %v2775_v61 }
 0x212   : > { %v828_v14 = vadd.s32 %v812_v58, %v732_v51  ;;  %v1006_v24 = vsel %vm990_vm15, 1, %v2388_v1  ;;  %vm1767_vm15 = vcmask 326912  }
 0x213   : > { %v827_v59 = vadd.s32 %v811_v19, %v731_v40 }
 0x214   : > { %v924_v54 = vadd.s32 %v908_v29, %v828_v14  ;;  %v958_v7 = vpop.permute.xlu1 %957 }
 0x215   : > { %vm986_vm2 = vcmp.eq.s32.totalorder %v958_v7, %v2775_v61 }
 0x216   : > { %v1002_v53 = vsel %vm986_vm2, 1, %v2388_v1 }
 0x217   : > { %v1018_v17 = vadd.s32 %v1002_v53, %v3239_v36  ;;  %v1004_v36 = vsel %vm988_vm5, 1, %v2388_v1 }
 0x218   : > { %v1020_v46 = vadd.s32 %v1004_v36, %v924_v54 }
 0x219   : > { %v1034_v26 = vcvt.s32.f32 %v1018_v17  ;;  %v679_v35 = vpop.permute.xlu1 %678  ;;  %v973_v17 = vpop.permute.xlu0 %972 }
 0x21a   : > { %v1036_v32 = vcvt.s32.f32 %v1020_v46  ;;  %vm701_vm9 = vcmp.eq.s32.totalorder %v679_v35, %v2775_v61 }
 0x21b   : > { %2064 = vmatmul.mubr.msk.f32.gmra.mxu0 %vm1060_vm8, %v1034_v26  ;;  %v717_v22 = vsel %vm701_vm9, 1, %v2388_v1 }
 0x21c   : > { %v733_v37 = vadd.s32 %v717_v22, %v3333_v12 }
 0x21e   : > { %v865_v8 = vpop.permute.xlu1 %864 }
 0x21f   : > { %vm891_vm7 = vcmp.eq.s32.totalorder %v865_v8, %v2775_v61 }
 0x220   : > { %v907_v43 = vsel %vm891_vm7, 1, %v2388_v1  ;;  %vm991_vm7 = vcmp.eq.s32.totalorder %v973_v17, %v2775_v61 }
 0x221   : > { %v923_v28 = vadd.s32 %v907_v43, %v827_v59  ;;  %v1007_v8 = vsel %vm991_vm7, 1, %v2388_v1  ;;  %vm1816_vm7 = vcmask 786112  }
 0x223   : > { %v1019_v30 = vadd.s32 %v1003_v10, %v923_v28  ;;  %v682_v49 = vpop.permute.xlu1 %681 }
 0x224   : > { %vm702_vm12 = vcmp.eq.s32.totalorder %v682_v49, %v2775_v61 }
 0x225   : > { %v1035_v56 = vcvt.s32.f32 %v1019_v30  ;;  %v718_v12 = vsel %vm702_vm12, 1, %v2388_v1 }
 0x226   : > { %v734_v0 = vadd.s32 %v718_v12, %v3296_v39 }
 0x227   : > { %v2056_v48 = vpop.f32.mrf.mxu0  ;;  %2066 = vmatprep.mubr.msk.f32.mxu0 %vm1060_vm8, %v1035_v56 }
 0x228   : > { %v589_v5 = vpop.permute.xlu1 %588  ;;  %2067 = vmatmul.mubr.msk.f32.gmra.mxu0 %vm1060_vm8, %v1036_v32  ;;  %v1191_v18 = vadd.f32 %v2056_v48, %v3266_v27 }
 0x229   : > { %v1185_v62 = vpop.f32.mrf.mxu0  ;;  %vm607_vm0 = vcmp.eq.s32.totalorder %v589_v5, %v2775_v61 }
 0x22a   : > { %v1186_v42 = vadd.f32 %v1185_v62, %v3266_v27  ;;  %v1257_v47 = vmax.f32 %v1191_v18, 0.0  ;;  %v623_v39 = vsel %vm607_vm0, 1, %v2388_v1  ;;  %vm1774_vm0 = vcmask 392512  }
 0x22b   : > { %v639_v7 = vadd.s32 %v623_v39, %v3327_v41 }
 0x22c   : > { %v1256_v50 = vmax.f32 %v1186_v42, 0.0 }
 0x22d   : > { %v775_v20 = vpop.permute.xlu1 %774 }
 0x22e   : > { %vm797_vm11 = vcmp.eq.s32.totalorder %v775_v20, %v2775_v61  ;;  %2086 = vmatprep.mubr.msk.f32.mxu1 %vm1278_vm1, %v1256_v50 }
 0x22f   : > { %v813_v63 = vsel %vm797_vm11, 1, %v2388_v1  ;;  %2087 = vmatmul.mubr.msk.f32.gmra.mxu1 %vm1278_vm1, %v1257_v47 }
 0x230   : > { %v829_v57 = vadd.s32 %v813_v63, %v733_v37 }
 0x232   : > { %v592_v55 = vpop.permute.xlu1 %591  ;;  %v925_v33 = vadd.s32 %v909_v2, %v829_v57  ;;  %v1276_v2 = vsub.s32 1, %v3252_v60 }
 0x233   : > { %vm608_vm5 = vcmp.eq.s32.totalorder %v592_v55, %v2775_v61 }
 0x234   : > { %v624_v41 = vsel %vm608_vm5, 1, %v2388_v1  ;;  %v3448_v55 = vrot.slane %v3261_v6, %v1276_v2  ;;  %vm1802_vm5 = vcmask 654912  }
 0x235   : > { %v640_v19 = vadd.s32 %v624_v41, %v3360_v4 }
 0x237   : > { %v778_v44 = vpop.permute.xlu1 %777 }
 0x238   : > { %vm798_vm13 = vcmp.eq.s32.totalorder %v778_v44, %v2775_v61 }
 0x239   : > { %v814_v9 = vsel %vm798_vm13, 1, %v2388_v1  ;;  %vm1753_vm13 = vcmask 195712  }
 0x23a   : > { %v830_v29 = vadd.s32 %v814_v9, %v734_v0 }
 0x23c   : > { %v685_v21 = vpop.permute.xlu1 %684 }
 0x23d   : > { %vm703_vm2 = vcmp.eq.s32.totalorder %v685_v21, %v2775_v61 }
 0x23e   : > { %v719_v54 = vsel %vm703_vm2, 1, %v2388_v1  ;;  %vm1781_vm2 = vcmask 458112  }
 0x23f   : > { %v735_v45 = vadd.s32 %v719_v54, %v639_v7 }
 0x240   : > { %v688_v11 = vpop.permute.xlu1 %687 }
 0x241   : > { %vm704_vm6 = vcmp.eq.s32.totalorder %v688_v11, %v2775_v61  ;;  %v831_v35 = vadd.s32 %v815_v15, %v735_v45 }
 0x242   : > { %v720_v34 = vsel %vm704_vm6, 1, %v2388_v1  ;;  %vm1809_vm6 = vcmask 720512  }
 0x243   : > { %v736_v43 = vadd.s32 %v720_v34, %v640_v19 }
 0x245   : > { %v874_v51 = vpop.permute.xlu1 %873 }
 0x246   : > { %vm894_vm14 = vcmp.eq.s32.totalorder %v874_v51, %v2775_v61 }
 0x247   : > { %v910_v31 = vsel %vm894_vm14, 1, %v2388_v1  ;;  %vm1760_vm14 = vcmask 261312  }
 0x248   : > { %v926_v58 = vadd.s32 %v910_v31, %v830_v29 }
 0x24a   : > { %v967_v14 = vpop.permute.xlu1 %966  ;;  %v1022_v3 = vadd.s32 %v1006_v24, %v926_v58 }
 0x24b   : > { %vm989_vm3 = vcmp.eq.s32.totalorder %v967_v14, %v2775_v61 }
 0x24c   : > { %v1005_v25 = vsel %vm989_vm3, 1, %v2388_v1  ;;  %v1038_v16 = vcvt.s32.f32 %v1022_v3  ;;  %vm1788_vm3 = vcmask 523712  }
 0x24d   : > { %v1021_v38 = vadd.s32 %v1005_v25, %v925_v33  ;;  %v1490_v33 = vsub.s32 2, %v3252_v60 }
 0x24f   : > { %v1037_v13 = vcvt.s32.f32 %v1021_v38  ;;  %v784_v53 = vpop.permute.xlu1 %783  ;;  %v3453_v11 = vrot.slane %v3261_v6, %v1490_v33 }
 0x250   : > { %vm800_vm10 = vcmp.eq.s32.totalorder %v784_v53, %v2775_v61 }
 0x251   : > { %2069 = vmatprep.mubr.msk.f32.mxu0 %vm1060_vm8, %v1037_v13  ;;  %v816_v36 = vsel %vm800_vm10, 1, %v2388_v1  ;;  %vm1830_vm10 = vcmask 917312  }
 0x252   : > { %2070 = vmatmul.mubr.msk.f32.gmra.mxu0 %vm1060_vm8, %v1038_v16  ;;  %v832_v30 = vadd.s32 %v816_v36, %v736_v43 }
 0x254   : > { %v877_v26 = vpop.permute.xlu1 %876 }
 0x255   : > { %vm895_vm9 = vcmp.eq.s32.totalorder %v877_v26, %v2775_v61 }
 0x256   : > { %v911_v23 = vsel %vm895_vm9, 1, %v2388_v1  ;;  %vm1823_vm9 = vcmask 851712  }
 0x257   : > { %v927_v40 = vadd.s32 %v911_v23, %v831_v35 }
 0x258   : > { %v880_v59 = vpop.permute.xlu1 %879 }
 0x259   : > { %v1023_v10 = vadd.s32 %v1007_v8, %v927_v40  ;;  %vm896_vm11 = vcmp.eq.s32.totalorder %v880_v59, %v2775_v61 }
 0x25a   : > { %v912_v46 = vsel %vm896_vm11, 1, %v2388_v1  ;;  %vm1837_vm11 = vcmask 982912  }
 0x25b   : > { %v1039_v28 = vcvt.s32.f32 %v1023_v10  ;;  %v928_v56 = vadd.s32 %v912_v46, %v832_v30 }
 0x25d   : > { %v976_v49 = vpop.permute.xlu1 %975  ;;  %2072 = vmatprep.mubr.msk.f32.mxu0 %vm1060_vm8, %v1039_v28 }
 0x25e   : > { %vm992_vm12 = vcmp.eq.s32.totalorder %v976_v49, %v2775_v61 }
 0x25f   : > { %v1008_v4 = vsel %vm992_vm12, 1, %v2388_v1  ;;  %vm1844_vm12 = vcmask 1048512  }
 0x260   : > { %v1024_v32 = vadd.s32 %v1008_v4, %v928_v56 }
 0x262   : > { %v1040_v48 = vcvt.s32.f32 %v1024_v32 }
 0x263   : > { %v2059_v5 = vpop.f32.mrf.mxu0 }
 0x264   : > { %2073 = vmatmul.mubr.msk.f32.gmra.mxu0 %vm1060_vm8, %v1040_v48  ;;  %v1201_v18 = vadd.f32 %v2059_v5, %v3266_v27  ;;  %vm1508_vm8 = vcmask 130048  }
 0x265   : > { %v1195_v62 = vpop.f32.mrf.mxu0 }
 0x266   : > { %v1196_v42 = vadd.f32 %v1195_v62, %v3266_v27  ;;  %v1259_v50 = vmax.f32 %v1201_v18, 0.0 }
 0x268   : > { %v1258_v22 = vmax.f32 %v1196_v42, 0.0 }
 0x26a   : > { %2089 = vmatprep.mubr.msk.f32.mxu1 %vm1278_vm1, %v1258_v22 }
 0x26b   : > { %2090 = vmatmul.mubr.msk.f32.gmra.mxu1 %vm1278_vm1, %v1259_v50 }
 0x29f   : > { %v2062_v47 = vpop.f32.mrf.mxu0 }
 0x2a0   : > { %v1211_v20 = vadd.f32 %v2062_v47, %v3266_v27 }
 0x2a1   : > { %v1205_v1 = vpop.f32.mrf.mxu0 }
 0x2a2   : > { %v1206_v37 = vadd.f32 %v1205_v1, %v3266_v27  ;;  %v1261_v57 = vmax.f32 %v1211_v20, 0.0 }
 0x2a4   : > { %v1260_v63 = vmax.f32 %v1206_v37, 0.0 }
 0x2a6   : > { %2092 = vmatprep.mubr.msk.f32.mxu1 %vm1278_vm1, %v1260_v63 }
 0x2a7   : > { %2093 = vmatmul.mubr.msk.f32.gmra.mxu1 %vm1278_vm1, %v1261_v57 }
 0x2b5   : > { %v2085_v44 = vpop.f32.mrf.mxu1 }
 0x2b6   : > { %v1399_v21 = vadd.f32 %v2085_v44, %v3448_v55 }
 0x2b7   : > { %v1393_v12 = vpop.f32.mrf.mxu1 }
 0x2b8   : > { %v1473_v9 = vmax.f32 %v1399_v21, 0.0  ;;  %v1394_v52 = vadd.f32 %v1393_v12, %v3448_v55 }
 0x2ba   : > { %v1493_v0 = vmul.f32 %v3453_v11, %v1473_v9  ;;  %v1472_v51 = vmax.f32 %v1394_v52, 0.0 }
 0x2bc   : > { %v1492_v29 = vmul.f32 %v3453_v11, %v1472_v51  ;;  %v1512_v31 = vsel %vm1508_vm8, %v1493_v0, 0.0 }
 0x2bd   : > { %1513 = vadd.xlane.f32.xlu1 %v1512_v31 }
 0x2be   : > { %v1509_v58 = vsel %vm1508_vm8, %v1492_v29, 0.0 }
 0x2bf   : > { %1510 = vadd.xlane.f32.xlu0 %v1509_v58 }
 0x2db   : > { %v2065_v24 = vpop.f32.mrf.mxu0 }
 0x2dc   : > { %v1221_v14 = vadd.f32 %v2065_v24, %v3266_v27 }
 0x2dd   : > { %v1215_v39 = vpop.f32.mrf.mxu0 }
 0x2de   : > { %v1216_v3 = vadd.f32 %v1215_v39, %v3266_v27  ;;  %v1263_v38 = vmax.f32 %v1221_v14, 0.0 }
 0x2e0   : > { %v1262_v25 = vmax.f32 %v1216_v3, 0.0 }
 0x2e2   : > { %2095 = vmatprep.mubr.msk.f32.mxu1 %vm1278_vm1, %v1262_v25 }
 0x2e3   : > { %2096 = vmatmul.mubr.msk.f32.gmra.mxu1 %vm1278_vm1, %v1263_v38 }
 0x2e8   : > { %v2068_v54 = vpop.f32.mrf.mxu0 }
 0x2e9   : > { %v1231_v7 = vadd.f32 %v2068_v54, %v3266_v27 }
 0x2ea   : > { %v1225_v13 = vpop.f32.mrf.mxu0 }
 0x2eb   : > { %v1226_v53 = vadd.f32 %v1225_v13, %v3266_v27  ;;  %v1265_v45 = vmax.f32 %v1231_v7, 0.0 }
 0x2ed   : > { %v1264_v16 = vmax.f32 %v1226_v53, 0.0 }
 0x2ef   : > { %v2088_v17 = vpop.f32.mrf.mxu1  ;;  %2098 = vmatprep.mubr.msk.f32.mxu1 %vm1278_vm1, %v1264_v16 }
 0x2f0   : > { %v1409_v15 = vadd.f32 %v2088_v17, %v3448_v55  ;;  %2099 = vmatmul.mubr.msk.f32.gmra.mxu1 %vm1278_vm1, %v1265_v45 }
 0x2f1   : > { %v1403_v26 = vpop.f32.mrf.mxu1 }
 0x2f2   : > { %v1475_v41 = vmax.f32 %v1409_v15, 0.0  ;;  %v1404_v35 = vadd.f32 %v1403_v26, %v3448_v55 }
 0x2f4   : > { %v1495_v23 = vmul.f32 %v3453_v11, %v1475_v41  ;;  %v1474_v34 = vmax.f32 %v1404_v35, 0.0  ;;  %v1559_v41 = vsub.s32 3, %v3252_v60 }
 0x2f6   : > { %v1494_v40 = vmul.f32 %v3453_v11, %v1474_v34  ;;  %v1518_v19 = vsel %vm1508_vm8, %v1495_v23, 0.0  ;;  %v3508_v34 = vrot.slane %v3261_v6, %v1559_v41 }
 0x2f7   : > { %1519 = vadd.xlane.f32.xlu0 %v1518_v19 }
 0x2f8   : > { %v1515_v8 = vsel %vm1508_vm8, %v1494_v40, 0.0 }
 0x2fb   : > { %1516 = vadd.xlane.f32.xlu0 %v1515_v8 }
 0x312   : > { %v2071_v59 = vpop.f32.mrf.mxu0 }
 0x313   : > { %v1241_v36 = vadd.f32 %v2071_v59, %v3266_v27 }
 0x314   : > { %v1235_v10 = vpop.f32.mrf.mxu0 }
 0x315   : > { %v1236_v43 = vadd.f32 %v1235_v10, %v3266_v27  ;;  %v1267_v46 = vmax.f32 %v1241_v36, 0.0 }
 0x317   : > { %v1266_v28 = vmax.f32 %v1236_v43, 0.0 }
 0x319   : > { %2101 = vmatprep.mubr.msk.f32.mxu1 %vm1278_vm1, %v1266_v28 }
 0x31a   : > { %2102 = vmatmul.mubr.msk.f32.gmra.mxu1 %vm1278_vm1, %v1267_v46 }
 0x324   : > { %v2074_v30 = vpop.f32.mrf.mxu0 }
 0x325   : > { %v1251_v49 = vadd.f32 %v2074_v30, %v3266_v27 }
 0x326   : > { %v1245_v56 = vpop.f32.mrf.mxu0 }
 0x327   : > { %v1246_v4 = vadd.f32 %v1245_v56, %v3266_v27  ;;  %v1269_v48 = vmax.f32 %v1251_v49, 0.0 }
 0x329   : > { %v1268_v32 = vmax.f32 %v1246_v4, 0.0 }
 0x32b   : > { %v2091_v5 = vpop.f32.mrf.mxu1  ;;  %2104 = vmatprep.mubr.msk.f32.mxu1 %vm1278_vm1, %v1268_v32 }
 0x32c   : > { %v1419_v18 = vadd.f32 %v2091_v5, %v3448_v55  ;;  %2105 = vmatmul.mubr.msk.f32.gmra.mxu1 %vm1278_vm1, %v1269_v48  ;;  %vm1746_vm1 = vcmask 130112  }
 0x32d   : > { %v1413_v62 = vpop.f32.mrf.mxu1 }
 0x32e   : > { %v1477_v42 = vmax.f32 %v1419_v18, 0.0  ;;  %v1414_v22 = vadd.f32 %v1413_v62, %v3448_v55 }
 0x330   : > { %v1497_v50 = vmul.f32 %v3453_v11, %v1477_v42  ;;  %v1476_v47 = vmax.f32 %v1414_v22, 0.0 }
 0x332   : > { %v1496_v20 = vmul.f32 %v3453_v11, %v1476_v47  ;;  %v1524_v27 = vsel %vm1508_vm8, %v1497_v50, 0.0 }
 0x333   : > { %1525 = vadd.xlane.f32.xlu0 %v1524_v27 }
 0x334   : > { %v1521_v1 = vsel %vm1508_vm8, %v1496_v20, 0.0 }
 0x335   : > { %1522 = vadd.xlane.f32.xlu1 %v1521_v1 }
 0x346   : > { %v1514_v40 = vpop.xlane.xlu1 %1513 }
 0x347   : > { %v1562_v28 = vadd.f32 %v3508_v34, %v1514_v40 }
 0x348   : > { %v1511_v35 = vpop.xlane.xlu0 %1510 }
 0x349   : > { %v1561_v36 = vadd.f32 %v3508_v34, %v1511_v35  ;;  %v1955_v48 = vmul.f32 -1.442695, %v1562_v28 }
 0x34b   : > { %v1954_v56 = vmul.f32 -1.442695, %v1561_v36 }
 0x34d   : > { %2254 = vpow2.f32 %v1954_v56 }
 0x34e   : > { %2256 = vpow2.f32 %v1955_v48 }
 0x367   : > { %v2094_v37 = vpop.f32.mrf.mxu1 }
 0x368   : > { %v1429_v63 = vadd.f32 %v2094_v37, %v3448_v55 }
 0x369   : > { %v1423_v57 = vpop.f32.mrf.mxu1 }
 0x36a   : > { %v1479_v2 = vmax.f32 %v1429_v63, 0.0  ;;  %v1424_v33 = vadd.f32 %v1423_v57, %v3448_v55 }
 0x36c   : > { %v1499_v44 = vmul.f32 %v3453_v11, %v1479_v2  ;;  %v1478_v21 = vmax.f32 %v1424_v33, 0.0 }
 0x36e   : > { %v1498_v12 = vmul.f32 %v3453_v11, %v1478_v21  ;;  %v1530_v9 = vsel %vm1508_vm8, %v1499_v44, 0.0 }
 0x36f   : > { %1531 = vadd.xlane.f32.xlu0 %v1530_v9 }
 0x370   : > { %v1527_v52 = vsel %vm1508_vm8, %v1498_v12, 0.0  ;;  %v2255_v12 = vpop.eup %2254 }
 0x371   : > { %1528 = vadd.xlane.f32.xlu1 %v1527_v52 }
 0x380   : > { %v1520_v8 = vpop.xlane.xlu0 %1519 }
 0x381   : > { %v1564_v49 = vadd.f32 %v3508_v34, %v1520_v8 }
 0x383   : > { %v1957_v18 = vmul.f32 -1.442695, %v1564_v49 }
 0x384   : > { %v1517_v32 = vpop.xlane.xlu0 %1516 }
 0x385   : > { %v1563_v62 = vadd.f32 %v3508_v34, %v1517_v32  ;;  %2258 = vpow2.f32 %v1957_v18 }
 0x387   : > { %v1956_v22 = vmul.f32 -1.442695, %v1563_v62 }
 0x389   : > { %2260 = vpow2.f32 %v1956_v22 }
 0x3a3   : > { %v2097_v0 = vpop.f32.mrf.mxu1 }
 0x3a4   : > { %v1439_v51 = vadd.f32 %v2097_v0, %v3448_v55  ;;  %v2257_v0 = vpop.eup %2256 }
 0x3a5   : > { %v1433_v29 = vpop.f32.mrf.mxu1 }
 0x3a6   : > { %v1481_v31 = vmax.f32 %v1439_v51, 0.0  ;;  %v1434_v58 = vadd.f32 %v1433_v29, %v3448_v55  ;;  %v2259_v51 = vpop.eup %2258  ;;  %v1625_v29 = vadd.f32 1.0, %v2255_v12 }
 0x3a8   : > { %v1501_v24 = vmul.f32 %v3453_v11, %v1481_v31  ;;  %v1480_v14 = vmax.f32 %v1434_v58, 0.0  ;;  %v1626_v58 = vadd.f32 1.0, %v2257_v0 }
 0x3aa   : > { %v1500_v39 = vmul.f32 %v3453_v11, %v1480_v14  ;;  %v1536_v3 = vsel %vm1508_vm8, %v1501_v24, 0.0 }
 0x3ab   : > { %1537 = vadd.xlane.f32.xlu0 %v1536_v3 }
 0x3ac   : > { %v1533_v25 = vsel %vm1508_vm8, %v1500_v39, 0.0  ;;  %v2261_v39 = vpop.eup %2260 }
 0x3ad   : > { %1534 = vadd.xlane.f32.xlu1 %v1533_v25 }
 0x3b0   : > { %v2100_v38 = vpop.f32.mrf.mxu1 }
 0x3b1   : > { %v1449_v54 = vadd.f32 %v2100_v38, %v3448_v55  ;;  %v1627_v38 = vadd.f32 1.0, %v2261_v39 }
 0x3b2   : > { %v1443_v7 = vpop.f32.mrf.mxu1 }
 0x3b3   : > { %v1483_v13 = vmax.f32 %v1449_v54, 0.0  ;;  %v1444_v53 = vadd.f32 %v1443_v7, %v3448_v55 }
 0x3b5   : > { %v1503_v16 = vmul.f32 %v3453_v11, %v1483_v13  ;;  %v1482_v45 = vmax.f32 %v1444_v53, 0.0 }
 0x3b7   : > { %v1502_v17 = vmul.f32 %v3453_v11, %v1482_v45  ;;  %v1542_v15 = vsel %vm1508_vm8, %v1503_v16, 0.0 }
 0x3b8   : > { %1543 = vadd.xlane.f32.xlu0 %v1542_v15 }
 0x3b9   : > { %v1539_v26 = vsel %vm1508_vm8, %v1502_v17, 0.0 }
 0x3ba   : > { %1540 = vadd.xlane.f32.xlu1 %v1539_v26 }
 0x3bc   : > { %v1526_v42 = vpop.xlane.xlu0 %1525 }
 0x3bd   : > { %v1566_v50 = vadd.f32 %v3508_v34, %v1526_v42 }
 0x3be   : > { %v1523_v47 = vpop.xlane.xlu1 %1522 }
 0x3bf   : > { %v1959_v27 = vmul.f32 -1.442695, %v1566_v50  ;;  %v1565_v1 = vadd.f32 %v3508_v34, %v1523_v47 }
 0x3c1   : > { %2262 = vpow2.f32 %v1959_v27  ;;  %v1958_v33 = vmul.f32 -1.442695, %v1565_v1 }
 0x3c3   : > { %2264 = vpow2.f32 %v1958_v33 }
 0x3c4   : > { %2266 = vrcp.f32 %v1625_v29 }
 0x3c5   : > { %2268 = vrcp.f32 %v1626_v58 }
 0x3ce   : > { %v2263_v7 = vpop.eup %2262 }
 0x3cf   : > { %v1630_v13 = vadd.f32 1.0, %v2263_v7 }
 0x3d0   : > { %v2265_v53 = vpop.eup %2264 }
 0x3d1   : > { %v1629_v16 = vadd.f32 1.0, %v2265_v53  ;;  %v2267_v45 = vpop.eup %2266 }
 0x3d2   : > { %v2269_v17 = vpop.eup %2268 }
 0x3da   : > { %v2103_v23 = vpop.f32.mrf.mxu1 }
 0x3db   : > { %v1459_v19 = vadd.f32 %v2103_v23, %v3448_v55 }
 0x3dc   : > { %v1453_v59 = vpop.f32.mrf.mxu1 }
 0x3dd   : > { %v1485_v10 = vmax.f32 %v1459_v19, 0.0  ;;  %v1454_v43 = vadd.f32 %v1453_v59, %v3448_v55 }
 0x3df   : > { %v1505_v46 = vmul.f32 %v3453_v11, %v1485_v10  ;;  %v1484_v30 = vmax.f32 %v1454_v43, 0.0 }
 0x3e1   : > { %v1504_v6 = vmul.f32 %v3453_v11, %v1484_v30  ;;  %v1548_v4 = vsel %vm1508_vm8, %v1505_v46, 0.0 }
 0x3e2   : > { %1549 = vadd.xlane.f32.xlu0 %v1548_v4 }
 0x3e3   : > { %v1545_v5 = vsel %vm1508_vm8, %v1504_v6, 0.0 }
 0x3e4   : > { %1546 = vadd.xlane.f32.xlu1 %v1545_v5 }
 0x3ec   : > { %v2106_v20 = vpop.f32.mrf.mxu1 }
 0x3ed   : > { %v1469_v37 = vadd.f32 %v2106_v20, %v3448_v55 }
 0x3ee   : > { %v1463_v63 = vpop.f32.mrf.mxu1 }
 0x3ef   : > { %v1487_v57 = vmax.f32 %v1469_v37, 0.0  ;;  %v1464_v2 = vadd.f32 %v1463_v63, %v3448_v55  ;;  %v1628_v55 = vadd.f32 1.0, %v2259_v51 }
 0x3f1   : > { %v1507_v44 = vmul.f32 %v3453_v11, %v1487_v57  ;;  %v1486_v21 = vmax.f32 %v1464_v2, 0.0  ;;  %2270 = vrcp.f32 %v1628_v55 }
 0x3f3   : > { %v1506_v9 = vmul.f32 %v3453_v11, %v1486_v21  ;;  %v1554_v52 = vsel %vm1508_vm8, %v1507_v44, 0.0 }
 0x3f4   : > { %1555 = vadd.xlane.f32.xlu0 %v1554_v52 }
 0x3f5   : > { %v1551_v31 = vsel %vm1508_vm8, %v1506_v9, 0.0 }
 0x3f6   : > { %1552 = vadd.xlane.f32.xlu1 %v1551_v31 }
 0x3f8   : > { %v1532_v24 = vpop.xlane.xlu0 %1531 }
 0x3f9   : > { %v1568_v14 = vadd.f32 %v3508_v34, %v1532_v24 }
 0x3fa   : > { %v1529_v3 = vpop.xlane.xlu1 %1528 }
 0x3fb   : > { %v1961_v11 = vmul.f32 -1.442695, %v1568_v14  ;;  %v1567_v25 = vadd.f32 %v3508_v34, %v1529_v3 }
 0x3fd   : > { %2272 = vpow2.f32 %v1961_v11  ;;  %v1960_v54 = vmul.f32 -1.442695, %v1567_v25 }
 0x3fe   : > { %v2271_v15 = vpop.eup %2270 }
 0x3ff   : > { %2274 = vpow2.f32 %v1960_v54 }
 0x400   : > { %2276 = vrcp.f32 %v1627_v38 }
 0x401   : > { %2278 = vrcp.f32 %v1630_v13 }
 0x402   : > { %2280 = vrcp.f32 %v1629_v16 }
 0x407   : > { %1690 = vperm.xlu1 %2253, %v2267_v45  }
 0x40a   : > { %v2273_v26 = vpop.eup %2272  ;;  %1693 = vperm.xlu0 %2252, %v2269_v17  }
 0x40b   : > { %v1632_v41 = vadd.f32 1.0, %v2273_v26  ;;  %1699 = vperm.xlu1 %2253, %v2271_v15   ;;  %v1741_v26 = vadd.s32 4294967288, %v2775_v61 }
 0x40c   : > { %v2275_v35 = vpop.eup %2274 }
 0x40d   : > { %2282 = vrcp.f32 %v1632_v41  ;;  %v1631_v23 = vadd.f32 1.0, %v2275_v35  ;;  %v2277_v40 = vpop.eup %2276  ;;  %v1748_v41 = vadd.s32 4294967280, %v2775_v61 }
 0x40e   : > { %v2279_v19 = vpop.eup %2278 }
 0x40f   : > { %1696 = vperm.xlu1 %2253, %v2277_v40   ;;  %2284 = vrcp.f32 %v1631_v23  ;;  %v2281_v8 = vpop.eup %2280  ;;  %v1744_v23 = vsub.s32 %v1741_v26, %v3252_v60 }
 0x413   : > { %1705 = vperm.xlu1 %2253, %v2279_v19   ;;  %v1751_v19 = vsub.s32 %v1748_v41, %v3252_v60 }
 0x417   : > { %1702 = vperm.xlu1 %2253, %v2281_v8   ;;  %v1762_v8 = vadd.s32 4294967264, %v2775_v61 }
 0x41a   : > { %v2283_v59 = vpop.eup %2282 }
 0x41b   : > { %1711 = vperm.xlu1 %2253, %v2283_v59   ;;  %v1739_v59 = vsub.s32 %v2775_v61, %v3252_v60 }
 0x41c   : > { %v2285_v36 = vpop.eup %2284 }
 0x41f   : > { %1708 = vperm.xlu1 %2253, %v2285_v36   ;;  %v1755_v36 = vadd.s32 4294967272, %v2775_v61 }
 0x434   : > { %v1538_v10 = vpop.xlane.xlu0 %1537 }
 0x435   : > { %v1570_v43 = vadd.f32 %v3508_v34, %v1538_v10 }
 0x436   : > { %v1535_v28 = vpop.xlane.xlu1 %1534 }
 0x437   : > { %v1963_v46 = vmul.f32 -1.442695, %v1570_v43  ;;  %v1569_v30 = vadd.f32 %v3508_v34, %v1535_v28 }
 0x439   : > { %2286 = vpow2.f32 %v1963_v46  ;;  %v1962_v49 = vmul.f32 -1.442695, %v1569_v30  ;;  %v1765_v46 = vsub.s32 %v1762_v8, %v3252_v60  ;;  %v1776_v30 = vadd.s32 4294967248, %v2775_v61 }
 0x43b   : > { %2288 = vpow2.f32 %v1962_v49 }
 0x441   : > { %v1544_v56 = vpop.xlane.xlu0 %1543 }
 0x442   : > { %v1572_v6 = vadd.f32 %v3508_v34, %v1544_v56  ;;  %v1758_v56 = vsub.s32 %v1755_v36, %v3252_v60 }
 0x443   : > { %v1541_v4 = vpop.xlane.xlu1 %1540 }
 0x444   : > { %v1965_v32 = vmul.f32 -1.442695, %v1572_v6  ;;  %v1571_v48 = vadd.f32 %v3508_v34, %v1541_v4  ;;  %v1769_v6 = vadd.s32 4294967256, %v2775_v61 }
 0x446   : > { %v2287_v5 = vpop.eup %2286  ;;  %2290 = vpow2.f32 %v1965_v32  ;;  %v1964_v18 = vmul.f32 -1.442695, %v1571_v48 }
 0x447   : > { %v1634_v62 = vadd.f32 1.0, %v2287_v5 }
 0x448   : > { %v2289_v42 = vpop.eup %2288  ;;  %2292 = vpow2.f32 %v1964_v18  ;;  %v1779_v18 = vsub.s32 %v1776_v30, %v3252_v60 }
 0x449   : > { %2294 = vrcp.f32 %v1634_v62  ;;  %v1633_v22 = vadd.f32 1.0, %v2289_v42  ;;  %v1790_v62 = vadd.s32 4294967232, %v2775_v61 }
 0x44b   : > { %2296 = vrcp.f32 %v1633_v22  ;;  %v1772_v22 = vsub.s32 %v1769_v6, %v3252_v60 }
 0x453   : > { %v2291_v50 = vpop.eup %2290 }
 0x454   : > { %v1636_v47 = vadd.f32 1.0, %v2291_v50  ;;  %v1783_v50 = vadd.s32 4294967240, %v2775_v61 }
 0x455   : > { %v2293_v20 = vpop.eup %2292 }
 0x456   : > { %v2295_v27 = vpop.eup %2294  ;;  %2298 = vrcp.f32 %v1636_v47  ;;  %v1635_v1 = vadd.f32 1.0, %v2293_v20 }
 0x457   : > { %1717 = vperm.xlu1 %2253, %v2295_v27  }
 0x458   : > { %2300 = vrcp.f32 %v1635_v1  ;;  %v2297_v37 = vpop.eup %2296  ;;  %v1793_v1 = vsub.s32 %v1790_v62, %v3252_v60 }
 0x45b   : > { %1714 = vperm.xlu1 %2253, %v2297_v37   ;;  %v1804_v37 = vadd.s32 4294967216, %v2775_v61 }
 0x463   : > { %v2299_v63 = vpop.eup %2298 }
 0x464   : > { %1723 = vperm.xlu1 %2253, %v2299_v63  }
 0x465   : > { %v2301_v57 = vpop.eup %2300 }
 0x466   : > { %1720 = vperm.xlu0 %2252, %v2301_v57   ;;  %v1786_v57 = vsub.s32 %v1783_v50, %v3252_v60 }
 0x46b   : > { %v1550_v2 = vpop.xlane.xlu0 %1549 }
 0x46c   : > { %v1574_v33 = vadd.f32 %v3508_v34, %v1550_v2  ;;  %v1797_v2 = vadd.s32 4294967224, %v2775_v61 }
 0x46d   : > { %v1547_v44 = vpop.xlane.xlu1 %1546 }
 0x46e   : > { %v1967_v21 = vmul.f32 -1.442695, %v1574_v33  ;;  %v1573_v12 = vadd.f32 %v3508_v34, %v1547_v44 }
 0x470   : > { %2302 = vpow2.f32 %v1967_v21  ;;  %v1966_v9 = vmul.f32 -1.442695, %v1573_v12 }
 0x472   : > { %2304 = vpow2.f32 %v1966_v9  ;;  %v1807_v9 = vsub.s32 %v1804_v37, %v3252_v60 }
 0x47d   : > { %v2303_v52 = vpop.eup %2302  ;;  %v1556_v0 = vpop.xlane.xlu0 %1555 }
 0x47e   : > { %v1638_v51 = vadd.f32 1.0, %v2303_v52  ;;  %v1576_v29 = vadd.f32 %v3508_v34, %v1556_v0  ;;  %v1818_v52 = vadd.s32 4294967200, %v2775_v61 }
 0x47f   : > { %v2305_v31 = vpop.eup %2304  ;;  %v1553_v58 = vpop.xlane.xlu1 %1552 }
 0x480   : > { %2306 = vrcp.f32 %v1638_v51  ;;  %v1637_v55 = vadd.f32 1.0, %v2305_v31  ;;  %v1969_v24 = vmul.f32 -1.442695, %v1576_v29  ;;  %v1575_v14 = vadd.f32 %v3508_v34, %v1553_v58 }
 0x481   : > { %v1800_v51 = vsub.s32 %v1797_v2, %v3252_v60  ;;  %v1811_v29 = vadd.s32 4294967208, %v2775_v61 }
 0x482   : > { %2308 = vrcp.f32 %v1637_v55  ;;  %v1968_v39 = vmul.f32 -1.442695, %v1575_v14 }
 0x483   : > { %2310 = vpow2.f32 %v1969_v24  ;;  %v1691_v16 = vpop.permute.xlu1 %1690 }
 0x484   : > { %2312 = vpow2.f32 %v1968_v39  ;;  %v1740_v49 = vrot.slane %v1691_v16, %v1739_v59  ;;  %v1821_v39 = vsub.s32 %v1818_v52, %v3252_v60 }
 0x485   : > { %v1694_v40 = vpop.permute.xlu0 %1693 }
 0x486   : > { %v1745_v10 = vrot.slane %v1694_v40, %v1744_v23 }
 0x487   : > { %v1700_v34 = vpop.permute.xlu1 %1699 }
 0x488   : > { %v1747_v4 = vsel %vm1746_vm1, %v1745_v10, %v1740_v49  ;;  %v1759_v42 = vrot.slane %v1700_v34, %v1758_v56 }
 0x48b   : > { %v1697_v45 = vpop.permute.xlu1 %1696 }
 0x48c   : > { %v1752_v28 = vrot.slane %v1697_v45, %v1751_v19 }
 0x48d   : > { %v2307_v3 = vpop.eup %2306 }
 0x48e   : > { %1729 = vperm.xlu1 %2253, %v2307_v3   ;;  %v1754_v48 = vsel %vm1753_vm13, %v1752_v28, %v1747_v4 }
 0x48f   : > { %v2309_v11 = vpop.eup %2308  ;;  %v1706_v17 = vpop.permute.xlu1 %1705  ;;  %v1761_v47 = vsel %vm1760_vm14, %v1759_v42, %v1754_v48 }
 0x490   : > { %v2311_v25 = vpop.eup %2310  ;;  %1726 = vperm.xlu0 %2252, %v2309_v11   ;;  %v1773_v63 = vrot.slane %v1706_v17, %v1772_v22  ;;  %v1814_v11 = vsub.s32 %v1811_v29, %v3252_v60 }
 0x491   : > { %v2313_v38 = vpop.eup %2312  ;;  %v1640_v54 = vadd.f32 1.0, %v2311_v25  ;;  %v1825_v25 = vadd.s32 4294967192, %v2775_v61 }
 0x492   : > { %v1639_v7 = vadd.f32 1.0, %v2313_v38 }
 0x493   : > { %2314 = vrcp.f32 %v1640_v54  ;;  %v1703_v15 = vpop.permute.xlu1 %1702  ;;  %v1832_v54 = vadd.s32 4294967184, %v2775_v61  ;;  %v1828_v17 = vsub.s32 %v1825_v25, %v3252_v60 }
 0x494   : > { %2316 = vrcp.f32 %v1639_v7  ;;  %v1766_v5 = vrot.slane %v1703_v15, %v1765_v46 }
 0x495   : > { %v1835_v15 = vsub.s32 %v1832_v54, %v3252_v60 }
 0x496   : > { %v1768_v20 = vsel %vm1767_vm15, %v1766_v5, %v1761_v47 }
 0x497   : > { %v1712_v35 = vpop.permute.xlu1 %1711  ;;  %v1775_v44 = vsel %vm1774_vm0, %v1773_v63, %v1768_v20 }
 0x498   : > { %v1787_v0 = vrot.slane %v1712_v35, %v1786_v57 }
 0x49b   : > { %v1709_v43 = vpop.permute.xlu1 %1708 }
 0x49c   : > { %v1780_v27 = vrot.slane %v1709_v43, %v1779_v18 }
 0x49e   : > { %v1782_v21 = vsel %vm1781_vm2, %v1780_v27, %v1775_v44 }
 0x49f   : > { %v1789_v58 = vsel %vm1788_vm3, %v1787_v0, %v1782_v21 }
 0x4a0   : > { %v2315_v13 = vpop.eup %2314 }
 0x4a1   : > { %v2317_v53 = vpop.eup %2316  ;;  %1735 = vperm.xlu1 %2253, %v2315_v13   ;;  %v1839_v13 = vadd.s32 4294967176, %v2775_v61 }
 0x4a2   : > { %1732 = vperm.xlu0 %2252, %v2317_v53  }
 0x4a3   : > { %v1842_v41 = vsub.s32 %v1839_v13, %v3252_v60 }
 0x4d2   : > { %v1718_v32 = vpop.permute.xlu1 %1717 }
 0x4d3   : > { %v1801_v3 = vrot.slane %v1718_v32, %v1800_v51 }
 0x4d6   : > { %v1715_v33 = vpop.permute.xlu1 %1714 }
 0x4d7   : > { %v1794_v12 = vrot.slane %v1715_v33, %v1793_v1 }
 0x4d9   : > { %v1796_v55 = vsel %vm1795_vm4, %v1794_v12, %v1789_v58 }
 0x4da   : > { %v1803_v7 = vsel %vm1802_vm5, %v1801_v3, %v1796_v55 }
 0x4df   : > { %v1724_v24 = vpop.permute.xlu1 %1723 }
 0x4e0   : > { %v1815_v45 = vrot.slane %v1724_v24, %v1814_v11 }
 0x4e1   : > { %v1721_v31 = vpop.permute.xlu0 %1720 }
 0x4e2   : > { %v1808_v14 = vrot.slane %v1721_v31, %v1807_v9 }
 0x4e4   : > { %v1810_v53 = vsel %vm1809_vm6, %v1808_v14, %v1803_v7 }
 0x4e5   : > { %v1817_v26 = vsel %vm1816_vm7, %v1815_v45, %v1810_v53 }
 0x509   : > { %v1730_v16 = vpop.permute.xlu1 %1729 }
 0x50a   : > { %v1829_v40 = vrot.slane %v1730_v16, %v1828_v17 }
 0x50b   : > { %v1727_v38 = vpop.permute.xlu0 %1726 }
 0x50c   : > { %v1822_v34 = vrot.slane %v1727_v38, %v1821_v39 }
 0x50e   : > { %v1824_v35 = vsel %vm1823_vm9, %v1822_v34, %v1817_v26 }
 0x50f   : > { %v1831_v59 = vsel %vm1830_vm10, %v1829_v40, %v1824_v35 }
 0x51c   : > { %v1736_v23 = vpop.permute.xlu1 %1735 }
 0x51d   : > { %v1733_v61 = vpop.permute.xlu0 %1732  ;;  %v1843_v8 = vrot.slane %v1736_v23, %v1842_v41 }
 0x51e   : > { %v1836_v19 = vrot.slane %v1733_v61, %v1835_v15 }
 0x520   : > { %v1838_v36 = vsel %vm1837_vm11, %v1836_v19, %v1831_v59 }
 0x521   : > { %v1845_v60 = vsel %vm1844_vm12, %v1843_v8, %v1838_v36 }
 0x522   : > { %1847 = vst [vmem:[%s136_s29] sm:$0x1] %v1845_v60 }
 0x523   : > { %2338 = shalt.err (!%p2335_p3)
}
 0x524   : > { %s2339_s21 = scalar_lea.hbm %s3575_s5, 16  ;;  %s2343_s22 = scalar_lea.hbm %s3612_s2, 32 }
 0x525   : > { %p2340_p4 = scmp.ne.s32.totalorder %s3575_s5, %s2339_s21  ;;  %p2344_p9 = scmp.lt.s32.totalorder %s3575_s5, %s3612_s2 }
 0x526   : > { %p2345_p10 = scmp.lt.s32.totalorder %s2343_s22, %s2339_s21 }
 0x527   : > { %p2341_p7 = pnand %p2340_p4, %p2447_p5 }
 0x528   : > { %p2346_p11 = por %p2345_p10, %p2344_p9 }
 0x529   : > { %p2342_p8 = pneg %p2341_p7 }
 0x52b   : > { %p2347_p12 = pnand %p2346_p11, %p2342_p8 }
 0x52d   : > { %2350 = shalt.err (!%p2347_p12)
}
 0x52e   : > { %2107 = dma.vmem_to_hbm [thread:$0]  (%p2447_p5), %s1862_s30, 16, %s3575_s5, %s1849_s6  }
 0x52f PF: > { %p2113_p13 = scmp.ge.s32.totalorder %s2385_s12, 2  ;;  %s1873_s25 = sand.u32 1, %s2373_s9  }
 0x530   : > { %s1874_s26 = scalar_lea.sflag [#allocation3], %s1873_s25 }
 0x531   : > { %p2110_p0 = pnand %p2113_p13, %p2451_p6 }
 0x533   : > { %p2111_p1 = pneg %p2110_p0 }
 0x535   : > { %2368 = dma.done.wait (%p2111_p1), %s1874_s26, 16  }
 0x536   : > { %2370 = vsyncadd (%p2111_p1), %s1874_s26, 4294967280  ;;  %p12_p2 = scmp.ge.s32.totalorder %s2435_s15, 4   ;;  %s3665_s9 = smov %s2377_s10 }
 0x537   : > { %s3666_s10 = smov %s2381_s11  ;;  %s3667_s11 = smov %s2445_s18 }
 0x538   : > { %s3668_s12 = smov %s2435_s15  ;;  %14 = sbr.rel (!%p12_p2) target bundleno = 3 (0x3), region = 63 }
 0x53d   :  { %1878 = vsyncpa [#allocation3], 1 }
 0x53e   :  { %1880 = vsyncpa [#allocation3 + $0x1], 1 }

</bundles_post_ra>
